<compile_context>
chip_gen: v7x
topology: tpu7x:2x2x1
jax: 0.10.0
libtpu: 0.0.40
codegen_flags: <defaults>
</compile_context>

<pallas_src>
import functools

import jax
import jax.numpy as jnp
from jax import lax
from jax.experimental import pallas as pl
from jax.experimental.pallas import tpu as pltpu

LN_EPS = 0.1  # Encoder(__init__ eps=0.1) -> nn.LayerNorm(hidden, eps=0.1)


def _round_up(n, m):
    return ((n + m - 1) // m) * m


# ---------------------------------------------------------------------------
# Kernel
# ---------------------------------------------------------------------------
def encoder_kernel(
    x_ref,
    w1_ref, b1_ref, g1_ref, be1_ref,
    w2_ref, b2_ref, g2_ref, be2_ref,
    w3_ref, b3_ref, g3_ref, be3_ref,
    w4_ref, b4_ref, g4_ref, be4_ref,
    w5_ref, b5_ref, g5_ref, be5_ref,
    wh_ref, bh_ref,
    out_ref,
    *, hidden_real,
):
    x = x_ref[...].astype(jnp.float32)

    # Row L2-normalize (no eps, matching x.pow(2).sum(-1).sqrt()); rsqrt runs
    # on the EUP slot instead of a VALU divide.
    x = x * lax.rsqrt(jnp.sum(x * x, axis=-1, keepdims=True))

    # Dropout: eval-mode identity (see module-level TODO).

    inv_h = jnp.float32(1.0 / hidden_real)

    def linear(h, w_ref, b_ref):
        w = w_ref[...]  # pre-cast to the compute dtype at init time
        return (
            jnp.dot(h.astype(w.dtype), w, preferred_element_type=jnp.float32)
            + b_ref[...]
        )

    def swish(h):
        return h * jax.nn.sigmoid(h)

    def layernorm(h, g_ref, b_ref):
        # One-pass statistics.  Padded hidden lanes carry exact zeros, so
        # they contribute nothing to the sums; the divisor is the REAL
        # hidden width.  gamma/beta are zero in padded lanes, so the output
        # stays exactly 0 there (keeps the next matmul / residual clean).
        s1 = jnp.sum(h, axis=-1, keepdims=True)
        s2 = jnp.sum(h * h, axis=-1, keepdims=True)
        mean = s1 * inv_h
        var = s2 * inv_h - mean * mean
        return (h - mean) * lax.rsqrt(var + LN_EPS) * g_ref[...] + b_ref[...]

    h1 = layernorm(swish(linear(x, w1_ref, b1_ref)), g1_ref, be1_ref)
    res = h1
    h2 = layernorm(swish(linear(h1, w2_ref, b2_ref) + res), g2_ref, be2_ref)
    res = res + h2
    h3 = layernorm(swish(linear(h2, w3_ref, b3_ref) + res), g3_ref, be3_ref)
    res = res + h3
    h4 = layernorm(swish(linear(h3, w4_ref, b4_ref) + res), g4_ref, be4_ref)
    res = res + h4
    h5 = layernorm(swish(linear(h4, w5_ref, b5_ref) + res), g5_ref, be5_ref)

    # Fused mu||logvar head, zero-padded to a lane-dense (128-wide) store.
    out_ref[...] = linear(h5, wh_ref, bh_ref).astype(out_ref.dtype)


# ---------------------------------------------------------------------------
# One-time parameter preparation (init time, NOT per forward)
# ---------------------------------------------------------------------------
def prepare_params(params, latent_dim, compute_dtype=jnp.bfloat16):
    """Pad hidden axis to a multiple of 128 lanes, fuse + pad the mu||logvar
    head to 128 output lanes, and pre-cast matmul weights to compute_dtype.
    Biases and LayerNorm params stay f32.  Returns a flat tuple in kernel
    argument order."""
    hidden = params["w1"].shape[1]
    hp = _round_up(hidden, 128)
    head_pad = _round_up(2 * latent_dim, 128)

    def padc(a, n):  # pad columns with zeros
        return jnp.pad(a, ((0, 0), (0, n - a.shape[1])))

    def padr(a, n):  # pad rows with zeros
        return jnp.pad(a, ((0, n - a.shape[0]), (0, 0)))

    cdt = compute_dtype
    out = [
        padc(params["w1"], hp).astype(cdt),
        padc(params["b1"], hp).astype(jnp.float32),
        padc(params["g1"], hp).astype(jnp.float32),
        padc(params["be1"], hp).astype(jnp.float32),
    ]
    for i in range(2, 6):
        out += [
            padc(padr(params[f"w{i}"], hp), hp).astype(cdt),
            padc(params[f"b{i}"], hp).astype(jnp.float32),
            padc(params[f"g{i}"], hp).astype(jnp.float32),
            padc(params[f"be{i}"], hp).astype(jnp.float32),
        ]
    w_head = jnp.concatenate([params["wmu"], params["wlv"]], axis=1)
    b_head = jnp.concatenate([params["bmu"], params["blv"]], axis=1)
    out += [
        padc(padr(w_head, hp), head_pad).astype(cdt),
        padc(b_head, head_pad).astype(jnp.float32),
    ]
    return tuple(jax.block_until_ready(a) for a in out)


# ---------------------------------------------------------------------------
# Forward wrapper
# ---------------------------------------------------------------------------
@functools.partial(
    jax.jit, static_argnames=("hidden_dim", "latent_dim", "tile_rows")
)
def encoder_forward(x, sub1, sub2, prepared, hidden_dim, latent_dim,
                    tile_rows=256):
    """Returns (mu, logvar), each [3, B, latent]: branch 0 = x, 1 = sub1,
    2 = sub2 (the three branches share all weights)."""
    B, input_dim = x.shape
    rows = 3 * B
    rows8 = _round_up(rows, 8)
    head_pad = prepared[-1].shape[-1]

    # Row-grid sizing: bounded padding waste (<= ~8 rows per step) and, when
    # there is enough work, an even number of >= 2 steps so the "parallel"
    # row axis can shard across v7x's two TensorCores.
    n_steps = max(1, pl.cdiv(rows8, tile_rows))
    if rows8 >= 16:
        n_steps = max(2, n_steps)
    if n_steps > 1 and n_steps % 2:
        n_steps += 1
    tm = _round_up(pl.cdiv(rows8, n_steps), 8)
    padded_rows = n_steps * tm

    # Single pre-kernel op: stack the three weight-sharing branches (and the
    # small row pad, filled with 1.0 so the L2-normalize of discarded rows
    # stays finite) into one [padded_rows, input_dim] row slab.
    pieces = [x, sub1, sub2]
    if padded_rows != rows:
        pieces.append(jnp.ones((padded_rows - rows, input_dim), x.dtype))
    stacked = jnp.concatenate(pieces, axis=0)

    def resident(arr):
        # Full-array block + constant index_map -> fetched once, resident in
        # VMEM across the whole row grid.  (If hidden_dim grows large, add
        # pipeline_mode=pl.Buffered(1) here and set vmem_limit_bytes.)
        return pl.BlockSpec(arr.shape, lambda i: (0, 0))

    in_specs = [pl.BlockSpec((tm, input_dim), lambda i: (i, 0))]
    in_specs += [resident(a) for a in prepared]

    out = pl.pallas_call(
        functools.partial(encoder_kernel, hidden_real=hidden_dim),
        out_shape=jax.ShapeDtypeStruct((padded_rows, head_pad), jnp.float32),
        grid_spec=pltpu.PrefetchScalarGridSpec(
            num_scalar_prefetch=0,
            grid=(n_steps,),
            in_specs=in_specs,
            out_specs=pl.BlockSpec((tm, head_pad), lambda i: (i, 0)),
        ),
        compiler_params=pltpu.CompilerParams(
            dimension_semantics=("parallel",),  # 2-TC sharding on v7x
        ),
    )(stacked, *prepared)

    # Single post-kernel slice + reshape: drop padded rows / lanes, split the
    # fused head into mu and logvar.
    out = out[:rows, : 2 * latent_dim].reshape(3, B, 2 * latent_dim)
    return out[..., :latent_dim], out[..., latent_dim:]


# ---------------------------------------------------------------------------
# Synthetic parameters + pure-JAX reference (mirrors the PyTorch forward)
# ---------------------------------------------------------------------------
def init_params(key, input_dim, hidden_dim, latent_dim):
    """Deterministic synthetic parameters (weights stored [in, out])."""
    keys = jax.random.split(key, 16)
    p = {}
    scale = 0.1

    def w(k, din, dout):
        return (scale * jax.random.normal(k, (din, dout))).astype(jnp.float32)

    def b(k, dout):
        return (scale * jax.random.normal(k, (1, dout))).astype(jnp.float32)

    p["w1"] = w(keys[0], input_dim, hidden_dim)
    p["b1"] = b(keys[1], hidden_dim)
    for i, ki in zip(range(2, 6), range(2, 10, 2)):
        p[f"w{i}"] = w(keys[ki], hidden_dim, hidden_dim)
        p[f"b{i}"] = b(keys[ki + 1], hidden_dim)
    for i in range(1, 6):
        # LayerNorm affine params (PyTorch default gamma=1, beta=0), slightly
        # perturbed so the kernel exercises them.
        p[f"g{i}"] = jnp.ones((1, hidden_dim), jnp.float32) + 0.01 * i
        p[f"be{i}"] = jnp.full((1, hidden_dim), 0.001 * i, jnp.float32)
    p["wmu"] = w(keys[10], hidden_dim, latent_dim)
    p["bmu"] = b(keys[11], latent_dim)
    p["wlv"] = w(keys[12], hidden_dim, latent_dim)
    p["blv"] = b(keys[13], latent_dim)
    return p


def reference_forward(x, sub1, sub2, params):
    """Pure-JAX reference mirroring the PyTorch forward (eval mode)."""
    def branch(z):
        z = z / jnp.sqrt(jnp.sum(z * z, axis=-1, keepdims=True))

        def lin(h, w, b):
            return h @ params[w] + params[b]

        def ln(h, g, b):
            m = jnp.mean(h, -1, keepdims=True)
            v = jnp.mean((h - m) ** 2, -1, keepdims=True)
            return (h - m) / jnp.sqrt(v + LN_EPS) * params[g] + params[b]

        sw = lambda h: h * jax.nn.sigmoid(h)
        h1 = ln(sw(lin(z, "w1", "b1")), "g1", "be1")
        h2 = ln(sw(lin(h1, "w2", "b2") + h1), "g2", "be2")
        h3 = ln(sw(lin(h2, "w3", "b3") + h1 + h2), "g3", "be3")
        h4 = ln(sw(lin(h3, "w4", "b4") + h1 + h2 + h3), "g4", "be4")
        h5 = ln(sw(lin(h4, "w5", "b5") + h1 + h2 + h3 + h4), "g5", "be5")
        return lin(h5, "wmu", "bmu"), lin(h5, "wlv", "blv")

    m, l = branch(x)
    m1, l1 = branch(sub1)
    m2, l2 = branch(sub2)
    return m, l, m1, l1, m2, l2


if __name__ == "__main__":
    B, INPUT_DIM, HIDDEN_DIM, LATENT_DIM = 4, 16, 32, 8

    key = jax.random.PRNGKey(0)
    kx, k1, k2, kp = jax.random.split(key, 4)
    x = jax.random.normal(kx, (B, INPUT_DIM), jnp.float32)
    sub1 = jax.random.normal(k1, (B, INPUT_DIM), jnp.float32)
    sub2 = jax.random.normal(k2, (B, INPUT_DIM), jnp.float32)
    params = init_params(kp, INPUT_DIM, HIDDEN_DIM, LATENT_DIM)

    refs = reference_forward(x, sub1, sub2, params)

    # f32 matmul path: must match the pure-JAX / PyTorch reference tightly.
    prep_f32 = prepare_params(params, LATENT_DIM, compute_dtype=jnp.float32)
    mu, lv = jax.block_until_ready(
        encoder_forward(x, sub1, sub2, prep_f32, HIDDEN_DIM, LATENT_DIM)
    )
    outs = (mu[0], lv[0], mu[1], lv[1], mu[2], lv[2])
    for o, r in zip(outs, refs):
        assert o.shape == r.shape
        err = float(jnp.max(jnp.abs(o - r)))
        assert err < 1e-4, err

    # bf16 matmul-operand path (production default: native MXU dtype, halved
    # resident weight bytes).  Looser tolerance: activations are re-quantized
    # at every layer input, so bf16 error compounds across 6 matmuls.
    prep_bf16 = prepare_params(params, LATENT_DIM, compute_dtype=jnp.bfloat16)
    mu_b, lv_b = jax.block_until_ready(
        encoder_forward(x, sub1, sub2, prep_bf16, HIDDEN_DIM, LATENT_DIM)
    )
    outs_b = (mu_b[0], lv_b[0], mu_b[1], lv_b[1], mu_b[2], lv_b[2])
    for o, r in zip(outs_b, refs):
        assert bool(jnp.all(jnp.isfinite(o)))
        err_b = float(jnp.max(jnp.abs(o - r)))
        assert err_b < 1e-1, err_b

    print("KERNEL_OK")
</pallas_src>

<mosaic_0001>
module attributes {stable_mosaic.version = 11 : i64} {
  func.func @encoder_kernel(%arg0: i32, %arg1: memref<8x16xf32, #tpu.memory_space<vmem>>, %arg2: memref<16x128xf32, #tpu.memory_space<vmem>>, %arg3: memref<1x128xf32, #tpu.memory_space<vmem>>, %arg4: memref<1x128xf32, #tpu.memory_space<vmem>>, %arg5: memref<1x128xf32, #tpu.memory_space<vmem>>, %arg6: memref<128x128xf32, #tpu.memory_space<vmem>>, %arg7: memref<1x128xf32, #tpu.memory_space<vmem>>, %arg8: memref<1x128xf32, #tpu.memory_space<vmem>>, %arg9: memref<1x128xf32, #tpu.memory_space<vmem>>, %arg10: memref<128x128xf32, #tpu.memory_space<vmem>>, %arg11: memref<1x128xf32, #tpu.memory_space<vmem>>, %arg12: memref<1x128xf32, #tpu.memory_space<vmem>>, %arg13: memref<1x128xf32, #tpu.memory_space<vmem>>, %arg14: memref<128x128xf32, #tpu.memory_space<vmem>>, %arg15: memref<1x128xf32, #tpu.memory_space<vmem>>, %arg16: memref<1x128xf32, #tpu.memory_space<vmem>>, %arg17: memref<1x128xf32, #tpu.memory_space<vmem>>, %arg18: memref<128x128xf32, #tpu.memory_space<vmem>>, %arg19: memref<1x128xf32, #tpu.memory_space<vmem>>, %arg20: memref<1x128xf32, #tpu.memory_space<vmem>>, %arg21: memref<1x128xf32, #tpu.memory_space<vmem>>, %arg22: memref<128x128xf32, #tpu.memory_space<vmem>>, %arg23: memref<1x128xf32, #tpu.memory_space<vmem>>, %arg24: memref<8x128xf32, #tpu.memory_space<vmem>>) attributes {dimension_semantics = [#tpu.dimension_semantics<parallel>], iteration_bounds = array<i64: 2>, scalar_prefetch = 0 : i64, scratch_operands = 0 : i64, tpu.core_type = #tpu.core_type<tc>, window_params = [{transform_indices = @transform_0, window_bounds = array<i64: 8, 16>}, {pipeline_mode = #tpu.pipeline_mode<synchronous>, transform_indices = @transform_1, window_bounds = array<i64: 16, 128>}, {pipeline_mode = #tpu.pipeline_mode<synchronous>, transform_indices = @transform_2, window_bounds = array<i64: 1, 128>}, {pipeline_mode = #tpu.pipeline_mode<synchronous>, transform_indices = @transform_3, window_bounds = array<i64: 1, 128>}, {pipeline_mode = #tpu.pipeline_mode<synchronous>, transform_indices = @transform_4, window_bounds = array<i64: 1, 128>}, {pipeline_mode = #tpu.pipeline_mode<synchronous>, transform_indices = @transform_5, window_bounds = array<i64: 128, 128>}, {pipeline_mode = #tpu.pipeline_mode<synchronous>, transform_indices = @transform_6, window_bounds = array<i64: 1, 128>}, {pipeline_mode = #tpu.pipeline_mode<synchronous>, transform_indices = @transform_7, window_bounds = array<i64: 1, 128>}, {pipeline_mode = #tpu.pipeline_mode<synchronous>, transform_indices = @transform_8, window_bounds = array<i64: 1, 128>}, {pipeline_mode = #tpu.pipeline_mode<synchronous>, transform_indices = @transform_9, window_bounds = array<i64: 128, 128>}, {pipeline_mode = #tpu.pipeline_mode<synchronous>, transform_indices = @transform_10, window_bounds = array<i64: 1, 128>}, {pipeline_mode = #tpu.pipeline_mode<synchronous>, transform_indices = @transform_11, window_bounds = array<i64: 1, 128>}, {pipeline_mode = #tpu.pipeline_mode<synchronous>, transform_indices = @transform_12, window_bounds = array<i64: 1, 128>}, {pipeline_mode = #tpu.pipeline_mode<synchronous>, transform_indices = @transform_13, window_bounds = array<i64: 128, 128>}, {pipeline_mode = #tpu.pipeline_mode<synchronous>, transform_indices = @transform_14, window_bounds = array<i64: 1, 128>}, {pipeline_mode = #tpu.pipeline_mode<synchronous>, transform_indices = @transform_15, window_bounds = array<i64: 1, 128>}, {pipeline_mode = #tpu.pipeline_mode<synchronous>, transform_indices = @transform_16, window_bounds = array<i64: 1, 128>}, {pipeline_mode = #tpu.pipeline_mode<synchronous>, transform_indices = @transform_17, window_bounds = array<i64: 128, 128>}, {pipeline_mode = #tpu.pipeline_mode<synchronous>, transform_indices = @transform_18, window_bounds = array<i64: 1, 128>}, {pipeline_mode = #tpu.pipeline_mode<synchronous>, transform_indices = @transform_19, window_bounds = array<i64: 1, 128>}, {pipeline_mode = #tpu.pipeline_mode<synchronous>, transform_indices = @transform_20, window_bounds = array<i64: 1, 128>}, {pipeline_mode = #tpu.pipeline_mode<synchronous>, transform_indices = @transform_21, window_bounds = array<i64: 128, 128>}, {pipeline_mode = #tpu.pipeline_mode<synchronous>, transform_indices = @transform_22, window_bounds = array<i64: 1, 128>}, {transform_indices = @transform_23, window_bounds = array<i64: 8, 128>}]} {
    %c0 = arith.constant 0 : index
    %c0_0 = arith.constant 0 : index
    %0 = vector.load %arg1[%c0, %c0_0] : memref<8x16xf32, #tpu.memory_space<vmem>>, vector<8x16xf32>
    %1 = arith.mulf %0, %0 : vector<8x16xf32>
    %cst = arith.constant dense<0.000000e+00> : vector<8xf32>
    %2 = vector.multi_reduction <add>, %1, %cst [1] : vector<8x16xf32> to vector<8xf32>
    %3 = vector.shape_cast %2 : vector<8xf32> to vector<8x1xf32>
    %4 = math.rsqrt %3 : vector<8x1xf32>
    %5 = vector.broadcast %4 : vector<8x1xf32> to vector<8x16xf32>
    %6 = arith.mulf %0, %5 : vector<8x16xf32>
    %c0_1 = arith.constant 0 : index
    %c0_2 = arith.constant 0 : index
    %7 = vector.load %arg2[%c0_1, %c0_2] : memref<16x128xf32, #tpu.memory_space<vmem>>, vector<16x128xf32>
    %cst_3 = arith.constant dense<0.000000e+00> : vector<8x128xf32>
    %8 = tpu.matmul %6, %7, %cst_3 {dimension_numbers = #tpu.dot_dimension_numbers<[1], [0], [0], [1], [0, 0, 1, 1], [], []>} : vector<8x16xf32>, vector<16x128xf32>, vector<8x128xf32> -> vector<8x128xf32>
    %c0_4 = arith.constant 0 : index
    %c0_5 = arith.constant 0 : index
    %9 = vector.load %arg3[%c0_4, %c0_5] : memref<1x128xf32, #tpu.memory_space<vmem>>, vector<1x128xf32>
    %10 = vector.broadcast %9 : vector<1x128xf32> to vector<8x128xf32>
    %11 = arith.addf %8, %10 : vector<8x128xf32>
    %12 = arith.negf %11 : vector<8x128xf32>
    %13 = math.exp %12 : vector<8x128xf32>
    %cst_6 = arith.constant 1.000000e+00 : f32
    %14 = vector.broadcast %cst_6 : f32 to vector<8x128xf32>
    %15 = arith.addf %14, %13 : vector<8x128xf32>
    %16 = arith.divf %14, %15 : vector<8x128xf32>
    %17 = arith.mulf %11, %16 : vector<8x128xf32>
    %cst_7 = arith.constant dense<0.000000e+00> : vector<8xf32>
    %18 = vector.multi_reduction <add>, %17, %cst_7 [1] : vector<8x128xf32> to vector<8xf32>
    %19 = vector.shape_cast %18 : vector<8xf32> to vector<8x1xf32>
    %20 = arith.mulf %17, %17 : vector<8x128xf32>
    %cst_8 = arith.constant dense<0.000000e+00> : vector<8xf32>
    %21 = vector.multi_reduction <add>, %20, %cst_8 [1] : vector<8x128xf32> to vector<8xf32>
    %22 = vector.shape_cast %21 : vector<8xf32> to vector<8x1xf32>
    %cst_9 = arith.constant 3.125000e-02 : f32
    %23 = vector.broadcast %cst_9 : f32 to vector<8x1xf32>
    %24 = arith.mulf %19, %23 : vector<8x1xf32>
    %cst_10 = arith.constant 3.125000e-02 : f32
    %25 = vector.broadcast %cst_10 : f32 to vector<8x1xf32>
    %26 = arith.mulf %22, %25 : vector<8x1xf32>
    %27 = arith.mulf %24, %24 : vector<8x1xf32>
    %28 = arith.subf %26, %27 : vector<8x1xf32>
    %29 = vector.broadcast %24 : vector<8x1xf32> to vector<8x128xf32>
    %30 = arith.subf %17, %29 : vector<8x128xf32>
    %cst_11 = arith.constant 1.000000e-01 : f32
    %31 = vector.broadcast %cst_11 : f32 to vector<8x1xf32>
    %32 = arith.addf %28, %31 : vector<8x1xf32>
    %33 = math.rsqrt %32 : vector<8x1xf32>
    %34 = vector.broadcast %33 : vector<8x1xf32> to vector<8x128xf32>
    %35 = arith.mulf %30, %34 : vector<8x128xf32>
    %c0_12 = arith.constant 0 : index
    %c0_13 = arith.constant 0 : index
    %36 = vector.load %arg4[%c0_12, %c0_13] : memref<1x128xf32, #tpu.memory_space<vmem>>, vector<1x128xf32>
    %37 = vector.broadcast %36 : vector<1x128xf32> to vector<8x128xf32>
    %38 = arith.mulf %35, %37 : vector<8x128xf32>
    %c0_14 = arith.constant 0 : index
    %c0_15 = arith.constant 0 : index
    %39 = vector.load %arg5[%c0_14, %c0_15] : memref<1x128xf32, #tpu.memory_space<vmem>>, vector<1x128xf32>
    %40 = vector.broadcast %39 : vector<1x128xf32> to vector<8x128xf32>
    %41 = arith.addf %38, %40 : vector<8x128xf32>
    %c0_16 = arith.constant 0 : index
    %c0_17 = arith.constant 0 : index
    %42 = vector.load %arg6[%c0_16, %c0_17] : memref<128x128xf32, #tpu.memory_space<vmem>>, vector<128x128xf32>
    %cst_18 = arith.constant dense<0.000000e+00> : vector<8x128xf32>
    %43 = tpu.matmul %41, %42, %cst_18 {dimension_numbers = #tpu.dot_dimension_numbers<[1], [0], [0], [1], [0, 0, 1, 1], [], []>} : vector<8x128xf32>, vector<128x128xf32>, vector<8x128xf32> -> vector<8x128xf32>
    %c0_19 = arith.constant 0 : index
    %c0_20 = arith.constant 0 : index
    %44 = vector.load %arg7[%c0_19, %c0_20] : memref<1x128xf32, #tpu.memory_space<vmem>>, vector<1x128xf32>
    %45 = vector.broadcast %44 : vector<1x128xf32> to vector<8x128xf32>
    %46 = arith.addf %43, %45 : vector<8x128xf32>
    %47 = arith.addf %46, %41 : vector<8x128xf32>
    %48 = arith.negf %47 : vector<8x128xf32>
    %49 = math.exp %48 : vector<8x128xf32>
    %cst_21 = arith.constant 1.000000e+00 : f32
    %50 = vector.broadcast %cst_21 : f32 to vector<8x128xf32>
    %51 = arith.addf %50, %49 : vector<8x128xf32>
    %52 = arith.divf %50, %51 : vector<8x128xf32>
    %53 = arith.mulf %47, %52 : vector<8x128xf32>
    %cst_22 = arith.constant dense<0.000000e+00> : vector<8xf32>
    %54 = vector.multi_reduction <add>, %53, %cst_22 [1] : vector<8x128xf32> to vector<8xf32>
    %55 = vector.shape_cast %54 : vector<8xf32> to vector<8x1xf32>
    %56 = arith.mulf %53, %53 : vector<8x128xf32>
    %cst_23 = arith.constant dense<0.000000e+00> : vector<8xf32>
    %57 = vector.multi_reduction <add>, %56, %cst_23 [1] : vector<8x128xf32> to vector<8xf32>
    %58 = vector.shape_cast %57 : vector<8xf32> to vector<8x1xf32>
    %cst_24 = arith.constant 3.125000e-02 : f32
    %59 = vector.broadcast %cst_24 : f32 to vector<8x1xf32>
    %60 = arith.mulf %55, %59 : vector<8x1xf32>
    %cst_25 = arith.constant 3.125000e-02 : f32
    %61 = vector.broadcast %cst_25 : f32 to vector<8x1xf32>
    %62 = arith.mulf %58, %61 : vector<8x1xf32>
    %63 = arith.mulf %60, %60 : vector<8x1xf32>
    %64 = arith.subf %62, %63 : vector<8x1xf32>
    %65 = vector.broadcast %60 : vector<8x1xf32> to vector<8x128xf32>
    %66 = arith.subf %53, %65 : vector<8x128xf32>
    %cst_26 = arith.constant 1.000000e-01 : f32
    %67 = vector.broadcast %cst_26 : f32 to vector<8x1xf32>
    %68 = arith.addf %64, %67 : vector<8x1xf32>
    %69 = math.rsqrt %68 : vector<8x1xf32>
    %70 = vector.broadcast %69 : vector<8x1xf32> to vector<8x128xf32>
    %71 = arith.mulf %66, %70 : vector<8x128xf32>
    %c0_27 = arith.constant 0 : index
    %c0_28 = arith.constant 0 : index
    %72 = vector.load %arg8[%c0_27, %c0_28] : memref<1x128xf32, #tpu.memory_space<vmem>>, vector<1x128xf32>
    %73 = vector.broadcast %72 : vector<1x128xf32> to vector<8x128xf32>
    %74 = arith.mulf %71, %73 : vector<8x128xf32>
    %c0_29 = arith.constant 0 : index
    %c0_30 = arith.constant 0 : index
    %75 = vector.load %arg9[%c0_29, %c0_30] : memref<1x128xf32, #tpu.memory_space<vmem>>, vector<1x128xf32>
    %76 = vector.broadcast %75 : vector<1x128xf32> to vector<8x128xf32>
    %77 = arith.addf %74, %76 : vector<8x128xf32>
    %78 = arith.addf %41, %77 : vector<8x128xf32>
    %c0_31 = arith.constant 0 : index
    %c0_32 = arith.constant 0 : index
    %79 = vector.load %arg10[%c0_31, %c0_32] : memref<128x128xf32, #tpu.memory_space<vmem>>, vector<128x128xf32>
    %cst_33 = arith.constant dense<0.000000e+00> : vector<8x128xf32>
    %80 = tpu.matmul %77, %79, %cst_33 {dimension_numbers = #tpu.dot_dimension_numbers<[1], [0], [0], [1], [0, 0, 1, 1], [], []>} : vector<8x128xf32>, vector<128x128xf32>, vector<8x128xf32> -> vector<8x128xf32>
    %c0_34 = arith.constant 0 : index
    %c0_35 = arith.constant 0 : index
    %81 = vector.load %arg11[%c0_34, %c0_35] : memref<1x128xf32, #tpu.memory_space<vmem>>, vector<1x128xf32>
    %82 = vector.broadcast %81 : vector<1x128xf32> to vector<8x128xf32>
    %83 = arith.addf %80, %82 : vector<8x128xf32>
    %84 = arith.addf %83, %78 : vector<8x128xf32>
    %85 = arith.negf %84 : vector<8x128xf32>
    %86 = math.exp %85 : vector<8x128xf32>
    %cst_36 = arith.constant 1.000000e+00 : f32
    %87 = vector.broadcast %cst_36 : f32 to vector<8x128xf32>
    %88 = arith.addf %87, %86 : vector<8x128xf32>
    %89 = arith.divf %87, %88 : vector<8x128xf32>
    %90 = arith.mulf %84, %89 : vector<8x128xf32>
    %cst_37 = arith.constant dense<0.000000e+00> : vector<8xf32>
    %91 = vector.multi_reduction <add>, %90, %cst_37 [1] : vector<8x128xf32> to vector<8xf32>
    %92 = vector.shape_cast %91 : vector<8xf32> to vector<8x1xf32>
    %93 = arith.mulf %90, %90 : vector<8x128xf32>
    %cst_38 = arith.constant dense<0.000000e+00> : vector<8xf32>
    %94 = vector.multi_reduction <add>, %93, %cst_38 [1] : vector<8x128xf32> to vector<8xf32>
    %95 = vector.shape_cast %94 : vector<8xf32> to vector<8x1xf32>
    %cst_39 = arith.constant 3.125000e-02 : f32
    %96 = vector.broadcast %cst_39 : f32 to vector<8x1xf32>
    %97 = arith.mulf %92, %96 : vector<8x1xf32>
    %cst_40 = arith.constant 3.125000e-02 : f32
    %98 = vector.broadcast %cst_40 : f32 to vector<8x1xf32>
    %99 = arith.mulf %95, %98 : vector<8x1xf32>
    %100 = arith.mulf %97, %97 : vector<8x1xf32>
    %101 = arith.subf %99, %100 : vector<8x1xf32>
    %102 = vector.broadcast %97 : vector<8x1xf32> to vector<8x128xf32>
    %103 = arith.subf %90, %102 : vector<8x128xf32>
    %cst_41 = arith.constant 1.000000e-01 : f32
    %104 = vector.broadcast %cst_41 : f32 to vector<8x1xf32>
    %105 = arith.addf %101, %104 : vector<8x1xf32>
    %106 = math.rsqrt %105 : vector<8x1xf32>
    %107 = vector.broadcast %106 : vector<8x1xf32> to vector<8x128xf32>
    %108 = arith.mulf %103, %107 : vector<8x128xf32>
    %c0_42 = arith.constant 0 : index
    %c0_43 = arith.constant 0 : index
    %109 = vector.load %arg12[%c0_42, %c0_43] : memref<1x128xf32, #tpu.memory_space<vmem>>, vector<1x128xf32>
    %110 = vector.broadcast %109 : vector<1x128xf32> to vector<8x128xf32>
    %111 = arith.mulf %108, %110 : vector<8x128xf32>
    %c0_44 = arith.constant 0 : index
    %c0_45 = arith.constant 0 : index
    %112 = vector.load %arg13[%c0_44, %c0_45] : memref<1x128xf32, #tpu.memory_space<vmem>>, vector<1x128xf32>
    %113 = vector.broadcast %112 : vector<1x128xf32> to vector<8x128xf32>
    %114 = arith.addf %111, %113 : vector<8x128xf32>
    %115 = arith.addf %78, %114 : vector<8x128xf32>
    %c0_46 = arith.constant 0 : index
    %c0_47 = arith.constant 0 : index
    %116 = vector.load %arg14[%c0_46, %c0_47] : memref<128x128xf32, #tpu.memory_space<vmem>>, vector<128x128xf32>
    %cst_48 = arith.constant dense<0.000000e+00> : vector<8x128xf32>
    %117 = tpu.matmul %114, %116, %cst_48 {dimension_numbers = #tpu.dot_dimension_numbers<[1], [0], [0], [1], [0, 0, 1, 1], [], []>} : vector<8x128xf32>, vector<128x128xf32>, vector<8x128xf32> -> vector<8x128xf32>
    %c0_49 = arith.constant 0 : index
    %c0_50 = arith.constant 0 : index
    %118 = vector.load %arg15[%c0_49, %c0_50] : memref<1x128xf32, #tpu.memory_space<vmem>>, vector<1x128xf32>
    %119 = vector.broadcast %118 : vector<1x128xf32> to vector<8x128xf32>
    %120 = arith.addf %117, %119 : vector<8x128xf32>
    %121 = arith.addf %120, %115 : vector<8x128xf32>
    %122 = arith.negf %121 : vector<8x128xf32>
    %123 = math.exp %122 : vector<8x128xf32>
    %cst_51 = arith.constant 1.000000e+00 : f32
    %124 = vector.broadcast %cst_51 : f32 to vector<8x128xf32>
    %125 = arith.addf %124, %123 : vector<8x128xf32>
    %126 = arith.divf %124, %125 : vector<8x128xf32>
    %127 = arith.mulf %121, %126 : vector<8x128xf32>
    %cst_52 = arith.constant dense<0.000000e+00> : vector<8xf32>
    %128 = vector.multi_reduction <add>, %127, %cst_52 [1] : vector<8x128xf32> to vector<8xf32>
    %129 = vector.shape_cast %128 : vector<8xf32> to vector<8x1xf32>
    %130 = arith.mulf %127, %127 : vector<8x128xf32>
    %cst_53 = arith.constant dense<0.000000e+00> : vector<8xf32>
    %131 = vector.multi_reduction <add>, %130, %cst_53 [1] : vector<8x128xf32> to vector<8xf32>
    %132 = vector.shape_cast %131 : vector<8xf32> to vector<8x1xf32>
    %cst_54 = arith.constant 3.125000e-02 : f32
    %133 = vector.broadcast %cst_54 : f32 to vector<8x1xf32>
    %134 = arith.mulf %129, %133 : vector<8x1xf32>
    %cst_55 = arith.constant 3.125000e-02 : f32
    %135 = vector.broadcast %cst_55 : f32 to vector<8x1xf32>
    %136 = arith.mulf %132, %135 : vector<8x1xf32>
    %137 = arith.mulf %134, %134 : vector<8x1xf32>
    %138 = arith.subf %136, %137 : vector<8x1xf32>
    %139 = vector.broadcast %134 : vector<8x1xf32> to vector<8x128xf32>
    %140 = arith.subf %127, %139 : vector<8x128xf32>
    %cst_56 = arith.constant 1.000000e-01 : f32
    %141 = vector.broadcast %cst_56 : f32 to vector<8x1xf32>
    %142 = arith.addf %138, %141 : vector<8x1xf32>
    %143 = math.rsqrt %142 : vector<8x1xf32>
    %144 = vector.broadcast %143 : vector<8x1xf32> to vector<8x128xf32>
    %145 = arith.mulf %140, %144 : vector<8x128xf32>
    %c0_57 = arith.constant 0 : index
    %c0_58 = arith.constant 0 : index
    %146 = vector.load %arg16[%c0_57, %c0_58] : memref<1x128xf32, #tpu.memory_space<vmem>>, vector<1x128xf32>
    %147 = vector.broadcast %146 : vector<1x128xf32> to vector<8x128xf32>
    %148 = arith.mulf %145, %147 : vector<8x128xf32>
    %c0_59 = arith.constant 0 : index
    %c0_60 = arith.constant 0 : index
    %149 = vector.load %arg17[%c0_59, %c0_60] : memref<1x128xf32, #tpu.memory_space<vmem>>, vector<1x128xf32>
    %150 = vector.broadcast %149 : vector<1x128xf32> to vector<8x128xf32>
    %151 = arith.addf %148, %150 : vector<8x128xf32>
    %152 = arith.addf %115, %151 : vector<8x128xf32>
    %c0_61 = arith.constant 0 : index
    %c0_62 = arith.constant 0 : index
    %153 = vector.load %arg18[%c0_61, %c0_62] : memref<128x128xf32, #tpu.memory_space<vmem>>, vector<128x128xf32>
    %cst_63 = arith.constant dense<0.000000e+00> : vector<8x128xf32>
    %154 = tpu.matmul %151, %153, %cst_63 {dimension_numbers = #tpu.dot_dimension_numbers<[1], [0], [0], [1], [0, 0, 1, 1], [], []>} : vector<8x128xf32>, vector<128x128xf32>, vector<8x128xf32> -> vector<8x128xf32>
    %c0_64 = arith.constant 0 : index
    %c0_65 = arith.constant 0 : index
    %155 = vector.load %arg19[%c0_64, %c0_65] : memref<1x128xf32, #tpu.memory_space<vmem>>, vector<1x128xf32>
    %156 = vector.broadcast %155 : vector<1x128xf32> to vector<8x128xf32>
    %157 = arith.addf %154, %156 : vector<8x128xf32>
    %158 = arith.addf %157, %152 : vector<8x128xf32>
    %159 = arith.negf %158 : vector<8x128xf32>
    %160 = math.exp %159 : vector<8x128xf32>
    %cst_66 = arith.constant 1.000000e+00 : f32
    %161 = vector.broadcast %cst_66 : f32 to vector<8x128xf32>
    %162 = arith.addf %161, %160 : vector<8x128xf32>
    %163 = arith.divf %161, %162 : vector<8x128xf32>
    %164 = arith.mulf %158, %163 : vector<8x128xf32>
    %cst_67 = arith.constant dense<0.000000e+00> : vector<8xf32>
    %165 = vector.multi_reduction <add>, %164, %cst_67 [1] : vector<8x128xf32> to vector<8xf32>
    %166 = vector.shape_cast %165 : vector<8xf32> to vector<8x1xf32>
    %167 = arith.mulf %164, %164 : vector<8x128xf32>
    %cst_68 = arith.constant dense<0.000000e+00> : vector<8xf32>
    %168 = vector.multi_reduction <add>, %167, %cst_68 [1] : vector<8x128xf32> to vector<8xf32>
    %169 = vector.shape_cast %168 : vector<8xf32> to vector<8x1xf32>
    %cst_69 = arith.constant 3.125000e-02 : f32
    %170 = vector.broadcast %cst_69 : f32 to vector<8x1xf32>
    %171 = arith.mulf %166, %170 : vector<8x1xf32>
    %cst_70 = arith.constant 3.125000e-02 : f32
    %172 = vector.broadcast %cst_70 : f32 to vector<8x1xf32>
    %173 = arith.mulf %169, %172 : vector<8x1xf32>
    %174 = arith.mulf %171, %171 : vector<8x1xf32>
    %175 = arith.subf %173, %174 : vector<8x1xf32>
    %176 = vector.broadcast %171 : vector<8x1xf32> to vector<8x128xf32>
    %177 = arith.subf %164, %176 : vector<8x128xf32>
    %cst_71 = arith.constant 1.000000e-01 : f32
    %178 = vector.broadcast %cst_71 : f32 to vector<8x1xf32>
    %179 = arith.addf %175, %178 : vector<8x1xf32>
    %180 = math.rsqrt %179 : vector<8x1xf32>
    %181 = vector.broadcast %180 : vector<8x1xf32> to vector<8x128xf32>
    %182 = arith.mulf %177, %181 : vector<8x128xf32>
    %c0_72 = arith.constant 0 : index
    %c0_73 = arith.constant 0 : index
    %183 = vector.load %arg20[%c0_72, %c0_73] : memref<1x128xf32, #tpu.memory_space<vmem>>, vector<1x128xf32>
    %184 = vector.broadcast %183 : vector<1x128xf32> to vector<8x128xf32>
    %185 = arith.mulf %182, %184 : vector<8x128xf32>
    %c0_74 = arith.constant 0 : index
    %c0_75 = arith.constant 0 : index
    %186 = vector.load %arg21[%c0_74, %c0_75] : memref<1x128xf32, #tpu.memory_space<vmem>>, vector<1x128xf32>
    %187 = vector.broadcast %186 : vector<1x128xf32> to vector<8x128xf32>
    %188 = arith.addf %185, %187 : vector<8x128xf32>
    %c0_76 = arith.constant 0 : index
    %c0_77 = arith.constant 0 : index
    %189 = vector.load %arg22[%c0_76, %c0_77] : memref<128x128xf32, #tpu.memory_space<vmem>>, vector<128x128xf32>
    %cst_78 = arith.constant dense<0.000000e+00> : vector<8x128xf32>
    %190 = tpu.matmul %188, %189, %cst_78 {dimension_numbers = #tpu.dot_dimension_numbers<[1], [0], [0], [1], [0, 0, 1, 1], [], []>} : vector<8x128xf32>, vector<128x128xf32>, vector<8x128xf32> -> vector<8x128xf32>
    %c0_79 = arith.constant 0 : index
    %c0_80 = arith.constant 0 : index
    %191 = vector.load %arg23[%c0_79, %c0_80] : memref<1x128xf32, #tpu.memory_space<vmem>>, vector<1x128xf32>
    %192 = vector.broadcast %191 : vector<1x128xf32> to vector<8x128xf32>
    %193 = arith.addf %190, %192 : vector<8x128xf32>
    %c0_81 = arith.constant 0 : index
    %c0_82 = arith.constant 0 : index
    %194 = vector.load %arg24[%c0_81, %c0_82] : memref<8x128xf32, #tpu.memory_space<vmem>>, vector<8x128xf32>
    tpu.vector_store %arg24[%c0_81, %c0_82], %193 {strides = array<i32>} : memref<8x128xf32, #tpu.memory_space<vmem>>, vector<8x128xf32>,
    return
  }
  func.func @transform_0(%arg0: i32) -> (i32, i32) {
    %c0_i32 = arith.constant 0 : i32
    %c0_i32_0 = arith.constant 0 : i32
    return %arg0, %c0_i32 : i32, i32
  }
  func.func @transform_1(%arg0: i32) -> (i32, i32) {
    %c0_i32 = arith.constant 0 : i32
    %c0_i32_0 = arith.constant 0 : i32
    %c0_i32_1 = arith.constant 0 : i32
    return %c0_i32, %c0_i32_0 : i32, i32
  }
  func.func @transform_2(%arg0: i32) -> (i32, i32) {
    %c0_i32 = arith.constant 0 : i32
    %c0_i32_0 = arith.constant 0 : i32
    %c0_i32_1 = arith.constant 0 : i32
    return %c0_i32, %c0_i32_0 : i32, i32
  }
  func.func @transform_3(%arg0: i32) -> (i32, i32) {
    %c0_i32 = arith.constant 0 : i32
    %c0_i32_0 = arith.constant 0 : i32
    %c0_i32_1 = arith.constant 0 : i32
    return %c0_i32, %c0_i32_0 : i32, i32
  }
  func.func @transform_4(%arg0: i32) -> (i32, i32) {
    %c0_i32 = arith.constant 0 : i32
    %c0_i32_0 = arith.constant 0 : i32
    %c0_i32_1 = arith.constant 0 : i32
    return %c0_i32, %c0_i32_0 : i32, i32
  }
  func.func @transform_5(%arg0: i32) -> (i32, i32) {
    %c0_i32 = arith.constant 0 : i32
    %c0_i32_0 = arith.constant 0 : i32
    %c0_i32_1 = arith.constant 0 : i32
    return %c0_i32, %c0_i32_0 : i32, i32
  }
  func.func @transform_6(%arg0: i32) -> (i32, i32) {
    %c0_i32 = arith.constant 0 : i32
    %c0_i32_0 = arith.constant 0 : i32
    %c0_i32_1 = arith.constant 0 : i32
    return %c0_i32, %c0_i32_0 : i32, i32
  }
  func.func @transform_7(%arg0: i32) -> (i32, i32) {
    %c0_i32 = arith.constant 0 : i32
    %c0_i32_0 = arith.constant 0 : i32
    %c0_i32_1 = arith.constant 0 : i32
    return %c0_i32, %c0_i32_0 : i32, i32
  }
  func.func @transform_8(%arg0: i32) -> (i32, i32) {
    %c0_i32 = arith.constant 0 : i32
    %c0_i32_0 = arith.constant 0 : i32
    %c0_i32_1 = arith.constant 0 : i32
    return %c0_i32, %c0_i32_0 : i32, i32
  }
  func.func @transform_9(%arg0: i32) -> (i32, i32) {
    %c0_i32 = arith.constant 0 : i32
    %c0_i32_0 = arith.constant 0 : i32
    %c0_i32_1 = arith.constant 0 : i32
    return %c0_i32, %c0_i32_0 : i32, i32
  }
  func.func @transform_10(%arg0: i32) -> (i32, i32) {
    %c0_i32 = arith.constant 0 : i32
    %c0_i32_0 = arith.constant 0 : i32
    %c0_i32_1 = arith.constant 0 : i32
    return %c0_i32, %c0_i32_0 : i32, i32
  }
  func.func @transform_11(%arg0: i32) -> (i32, i32) {
    %c0_i32 = arith.constant 0 : i32
    %c0_i32_0 = arith.constant 0 : i32
    %c0_i32_1 = arith.constant 0 : i32
    return %c0_i32, %c0_i32_0 : i32, i32
  }
  func.func @transform_12(%arg0: i32) -> (i32, i32) {
    %c0_i32 = arith.constant 0 : i32
    %c0_i32_0 = arith.constant 0 : i32
    %c0_i32_1 = arith.constant 0 : i32
    return %c0_i32, %c0_i32_0 : i32, i32
  }
  func.func @transform_13(%arg0: i32) -> (i32, i32) {
    %c0_i32 = arith.constant 0 : i32
    %c0_i32_0 = arith.constant 0 : i32
    %c0_i32_1 = arith.constant 0 : i32
    return %c0_i32, %c0_i32_0 : i32, i32
  }
  func.func @transform_14(%arg0: i32) -> (i32, i32) {
    %c0_i32 = arith.constant 0 : i32
    %c0_i32_0 = arith.constant 0 : i32
    %c0_i32_1 = arith.constant 0 : i32
    return %c0_i32, %c0_i32_0 : i32, i32
  }
  func.func @transform_15(%arg0: i32) -> (i32, i32) {
    %c0_i32 = arith.constant 0 : i32
    %c0_i32_0 = arith.constant 0 : i32
    %c0_i32_1 = arith.constant 0 : i32
    return %c0_i32, %c0_i32_0 : i32, i32
  }
  func.func @transform_16(%arg0: i32) -> (i32, i32) {
    %c0_i32 = arith.constant 0 : i32
    %c0_i32_0 = arith.constant 0 : i32
    %c0_i32_1 = arith.constant 0 : i32
    return %c0_i32, %c0_i32_0 : i32, i32
  }
  func.func @transform_17(%arg0: i32) -> (i32, i32) {
    %c0_i32 = arith.constant 0 : i32
    %c0_i32_0 = arith.constant 0 : i32
    %c0_i32_1 = arith.constant 0 : i32
    return %c0_i32, %c0_i32_0 : i32, i32
  }
  func.func @transform_18(%arg0: i32) -> (i32, i32) {
    %c0_i32 = arith.constant 0 : i32
    %c0_i32_0 = arith.constant 0 : i32
    %c0_i32_1 = arith.constant 0 : i32
    return %c0_i32, %c0_i32_0 : i32, i32
  }
  func.func @transform_19(%arg0: i32) -> (i32, i32) {
    %c0_i32 = arith.constant 0 : i32
    %c0_i32_0 = arith.constant 0 : i32
    %c0_i32_1 = arith.constant 0 : i32
    return %c0_i32, %c0_i32_0 : i32, i32
  }
  func.func @transform_20(%arg0: i32) -> (i32, i32) {
    %c0_i32 = arith.constant 0 : i32
    %c0_i32_0 = arith.constant 0 : i32
    %c0_i32_1 = arith.constant 0 : i32
    return %c0_i32, %c0_i32_0 : i32, i32
  }
  func.func @transform_21(%arg0: i32) -> (i32, i32) {
    %c0_i32 = arith.constant 0 : i32
    %c0_i32_0 = arith.constant 0 : i32
    %c0_i32_1 = arith.constant 0 : i32
    return %c0_i32, %c0_i32_0 : i32, i32
  }
  func.func @transform_22(%arg0: i32) -> (i32, i32) {
    %c0_i32 = arith.constant 0 : i32
    %c0_i32_0 = arith.constant 0 : i32
    %c0_i32_1 = arith.constant 0 : i32
    return %c0_i32, %c0_i32_0 : i32, i32
  }
  func.func @transform_23(%arg0: i32) -> (i32, i32) {
    %c0_i32 = arith.constant 0 : i32
    %c0_i32_0 = arith.constant 0 : i32
    return %arg0, %c0_i32 : i32, i32
  }
}

</mosaic_0001>

<bundles_post_ra>
// kernel: encoder_forward.1
= control target key start
LH: loop header
LB: loop body
LE: loop exit
PB: predicated region body
PF: predicated region fallthrough
CT: control target
= control target key end

     0   :  { %s2757_s0 = inlined_call_operand.vmem [shape: f32[16,16], index: 0, kind: input, shape index: {}]   ;;  %s2758_s1 = inlined_call_operand.vmem [shape: f32[16,128], index: 1, kind: input, shape index: {}]   ;;  %s2759_s2 = inlined_call_operand.vmem [shape: f32[1,128], index: 2, kind: input, shape index: {}]   ;;  %s2760_s3 = inlined_call_operand.vmem [shape: f32[1,128], index: 3, kind: input, shape index: {}]   ;;  %s2761_s4 = inlined_call_operand.vmem [shape: f32[1,128], index: 4, kind: input, shape index: {}]   ;;  %s2762_s5 = inlined_call_operand.hbm [shape: f32[128,128], index: 5, kind: input, shape index: {}]   ;;  %s2763_s6 = inlined_call_operand.vmem [shape: f32[1,128], index: 6, kind: input, shape index: {}]   ;;  %s2764_s7 = inlined_call_operand.vmem [shape: f32[1,128], index: 7, kind: input, shape index: {}]   ;;  %s2765_s8 = inlined_call_operand.vmem [shape: f32[1,128], index: 8, kind: input, shape index: {}]   ;;  %s2766_s9 = inlined_call_operand.hbm [shape: f32[128,128], index: 9, kind: input, shape index: {}]   ;;  %s2767_s10 = inlined_call_operand.vmem [shape: f32[1,128], index: 10, kind: input, shape index: {}]   ;;  %s2768_s11 = inlined_call_operand.vmem [shape: f32[1,128], index: 11, kind: input, shape index: {}]   ;;  %s2769_s12 = inlined_call_operand.vmem [shape: f32[1,128], index: 12, kind: input, shape index: {}]   ;;  %s2770_s13 = inlined_call_operand.hbm [shape: f32[128,128], index: 13, kind: input, shape index: {}]   ;;  %s2771_s14 = inlined_call_operand.vmem [shape: f32[1,128], index: 14, kind: input, shape index: {}]   ;;  %s2772_s15 = inlined_call_operand.vmem [shape: f32[1,128], index: 15, kind: input, shape index: {}]   ;;  %s2773_s16 = inlined_call_operand.vmem [shape: f32[1,128], index: 16, kind: input, shape index: {}]   ;;  %s2774_s17 = inlined_call_operand.hbm [shape: f32[128,128], index: 17, kind: input, shape index: {}]   ;;  %s2775_s18 = inlined_call_operand.vmem [shape: f32[1,128], index: 18, kind: input, shape index: {}]   ;;  %s2776_s19 = inlined_call_operand.vmem [shape: f32[1,128], index: 19, kind: input, shape index: {}]   ;;  %s2777_s20 = inlined_call_operand.vmem [shape: f32[1,128], index: 20, kind: input, shape index: {}]   ;;  %s2778_s21 = inlined_call_operand.hbm [shape: f32[128,128], index: 21, kind: input, shape index: {}]   ;;  %s2779_s22 = inlined_call_operand.vmem [shape: f32[1,128], index: 22, kind: input, shape index: {}]   ;;  %s2780_s23 = inlined_call_operand.vmem [shape: f32[16,128], index: 23, kind: output, shape index: {}]  }
   0x1   :  { %2786 = sst [smem:[#allocation14_spill]] %s2757_s0 }
   0x2   :  { %2787 = sst [smem:[#allocation15_spill]] %s2758_s1 }
   0x3   :  { %2788 = sst [smem:[#allocation16_spill]] %s2759_s2 }
   0x4   :  { %2789 = sst [smem:[#allocation17_spill]] %s2760_s3 }
   0x5   :  { %2790 = sst [smem:[#allocation18_spill]] %s2761_s4 }
   0x6   :  { %2791 = sst [smem:[#allocation19_spill]] %s2762_s5 }
   0x7   :  { %2792 = sst [smem:[#allocation20_spill]] %s2763_s6 }
   0x8   :  { %2793 = sst [smem:[#allocation21_spill]] %s2764_s7 }
   0x9   :  { %2794 = sst [smem:[#allocation22_spill]] %s2776_s19 }
   0xa   :  { %2795 = sst [smem:[#allocation23_spill]] %s2777_s20 }
   0xb   :  { %2796 = sst [smem:[#allocation24_spill]] %s2779_s22 }
   0xc   :  { %2797 = sst [smem:[#allocation25_spill]] %s2780_s23 }
   0xd   :  { %28 = vsyncpa [#allocation3], 0 }
   0xe   :  { %29 = vsyncpa [#allocation5], 0 }
   0xf   :  { %30 = vsyncpa [#allocation8], 0  ;;  %s2445_s4 = smov 0  }
  0x10 LB: > { %2798 = sst [smem:[#allocation13_spill]] %s2313_s4  ;;  %s2451_s30 = sadd.s32 4294967295, %s2313_s4   ;;  %s2313_s4 = sphi %s2445_s4, %s36_s4  }
  0x11   : > { %p1627_p0 = scmp.ge.s32.totalorder %s2313_s4, 1  ;;  %p555_p1 = scmp.lt.s32.totalorder %s2313_s4, 3 }
  0x12   : > { %p2784_p2 = scmp.eq.s32.totalorder %s2451_s30, 0  ;;  %s2315_s25 = smov [#allocation4]  }
  0x13   : > { %p2456_p3 = pnand %p1627_p0, %p555_p1  ;;  %s601_s5 = sshll.u32 %s2315_s25, 4  ;;  %s2460_s5 = int_to_ptr.vmem [resolvable:$true] %s601_s5 }
  0x14   : > { %s2316_s1 = smov [#allocation7]   ;;  %s2317_s6 = smov [#allocation2]  }
  0x15   : > { %s2799_s24 = scalar_select %p2456_p3, 1, 0 }
  0x16   : > { %p2079_p4 = pneg %p2456_p3  ;;  %s645_s26 = sshll.u32 %s2316_s1, 4  ;;  %s2464_s26 = int_to_ptr.vmem [resolvable:$true] %s645_s26 }
  0x17   : > { %s579_s27 = sshll.u32 %s2317_s6, 4  ;;  %s2318_s7 = smov [#allocation6]   ;;  %s2472_s27 = int_to_ptr.vmem [resolvable:$true] %s579_s27 }
  0x18   : > { %p2468_p5 = pnand %p2784_p2, %p2079_p4  ;;  %s2474_s28 = sshll.u32 %s2318_s7, 4  ;;  %s624_s28 = int_to_ptr.vmem [resolvable:$true] %s2474_s28 }
  0x19   : > { %s2155_s0 = scalar_lea.hbm %s2766_s9, 2048 }
  0x1a   : > { %p2156_p6 = scmp.ne.s32.totalorder %s2766_s9, %s2155_s0  ;;  %p2484_p7 = pneg %p2468_p5 }
  0x1b   : > { %p2162_p10 = scmp.lt.u32.totalorder %s2155_s0, %s2766_s9 }
  0x1c   : > { %p2158_p8 = pnand %p2484_p7, %p2156_p6 }
  0x1e   : > { %p2159_p9 = pneg %p2158_p8 }
  0x20   : > { %p2164_p11 = pnand %p2162_p10, %p2159_p9 }
  0x22   : > { %2167 = shalt.err (!%p2164_p11)
}
  0x23   : > { %s2168_s29 = scalar_lea.vmem %s2460_s5, 2048  ;;  %p2176_p1 = scmp.lt.s32.totalorder %s2460_s5, %s2460_s5 }
  0x24   : > { %p2169_p12 = scmp.ne.s32.totalorder %s2460_s5, %s2168_s29  ;;  %p2177_p4 = scmp.lt.s32.totalorder %s2168_s29, %s2168_s29 }
  0x26   : > { %p2171_p13 = pnand %p2169_p12, %p2484_p7  ;;  %p2178_p6 = por %p2177_p4, %p2176_p1 }
  0x28   : > { %p2172_p0 = pneg %p2171_p13 }
  0x2a   : > { %p2179_p8 = pnand %p2178_p6, %p2172_p0 }
  0x2c   : > { %2182 = shalt.err (!%p2179_p8)
}
  0x2d   : > { %s2319_s3 = smov 128   ;;  %s2320_s0 = smov 8  }
  0x2e   : > { %2085 = dma.hbm_to_vmem [thread:$0]  (!%p2468_p5), %s2766_s9, 2048, %s2460_s5, [#allocation5], %s2319_s3, %s2319_s3, %s2320_s0  }
  0x2f   : > { %s2183_s29 = scalar_lea.hbm %s2774_s17, 2048 }
  0x30   : > { %p2184_p9 = scmp.ne.s32.totalorder %s2774_s17, %s2183_s29  ;;  %p2190_p12 = scmp.lt.u32.totalorder %s2183_s29, %s2774_s17 }
  0x32   : > { %p2186_p10 = pnand %p2184_p9, %p2484_p7 }
  0x34   : > { %p2187_p11 = pneg %p2186_p10 }
  0x36   : > { %p2192_p13 = pnand %p2190_p12, %p2187_p11 }
  0x38   : > { %2195 = shalt.err (!%p2192_p13)
}
  0x39   : > { %s2196_s5 = scalar_lea.vmem %s2464_s26, 2048  ;;  %p2204_p6 = scmp.lt.s32.totalorder %s2464_s26, %s2464_s26 }
  0x3a   : > { %p2197_p0 = scmp.ne.s32.totalorder %s2464_s26, %s2196_s5  ;;  %p2205_p8 = scmp.lt.s32.totalorder %s2196_s5, %s2196_s5 }
  0x3c   : > { %p2199_p1 = pnand %p2197_p0, %p2484_p7  ;;  %p2206_p9 = por %p2205_p8, %p2204_p6 }
  0x3e   : > { %p2200_p4 = pneg %p2199_p1 }
  0x40   : > { %p2207_p10 = pnand %p2206_p9, %p2200_p4 }
  0x42   : > { %2210 = shalt.err (!%p2207_p10)
}
  0x43   : > { %2091 = dma.hbm_to_vmem [thread:$0]  (!%p2468_p5), %s2774_s17, 2048, %s2464_s26, [#allocation8], %s2319_s3, %s2319_s3, %s2320_s0  }
  0x44   : > { %s2802_s25 = sld [smem:[#allocation19_spill]] }
  0x4a   : > { %s2211_s1 = scalar_lea.hbm %s2802_s25, 2048 }
  0x4b   : > { %p2212_p11 = scmp.ne.s32.totalorder %s2802_s25, %s2211_s1  ;;  %p2218_p0 = scmp.lt.u32.totalorder %s2211_s1, %s2802_s25 }
  0x4d   : > { %p2214_p12 = pnand %p2212_p11, %p2484_p7 }
  0x4f   : > { %p2215_p13 = pneg %p2214_p12 }
  0x51   : > { %p2220_p1 = pnand %p2218_p0, %p2215_p13 }
  0x53   : > { %2223 = shalt.err (!%p2220_p1)
}
  0x54   : > { %s2224_s26 = scalar_lea.vmem %s2472_s27, 2048  ;;  %p2232_p9 = scmp.lt.s32.totalorder %s2472_s27, %s2472_s27 }
  0x55   : > { %p2225_p4 = scmp.ne.s32.totalorder %s2472_s27, %s2224_s26  ;;  %p2233_p10 = scmp.lt.s32.totalorder %s2224_s26, %s2224_s26 }
  0x57   : > { %p2227_p6 = pnand %p2225_p4, %p2484_p7  ;;  %p2234_p11 = por %p2233_p10, %p2232_p9 }
  0x59   : > { %p2228_p8 = pneg %p2227_p6 }
  0x5b   : > { %p2235_p12 = pnand %p2234_p11, %p2228_p8 }
  0x5d   : > { %2238 = shalt.err (!%p2235_p12)
}
  0x5e   : > { %2082 = dma.hbm_to_vmem [thread:$0]  (!%p2468_p5), %s2802_s25, 2048, %s2472_s27, [#allocation3], %s2319_s3, %s2319_s3, %s2320_s0  }
  0x5f   : > { %s2239_s1 = scalar_lea.hbm %s2770_s13, 2048 }
  0x60   : > { %p2240_p13 = scmp.ne.s32.totalorder %s2770_s13, %s2239_s1  ;;  %p2246_p4 = scmp.lt.u32.totalorder %s2239_s1, %s2770_s13 }
  0x62   : > { %p2242_p0 = pnand %p2240_p13, %p2484_p7 }
  0x64   : > { %p2243_p1 = pneg %p2242_p0 }
  0x66   : > { %p2248_p6 = pnand %p2246_p4, %p2243_p1 }
  0x68   : > { %2251 = shalt.err (!%p2248_p6)
}
  0x69   : > { %s2252_s26 = scalar_lea.vmem %s624_s28, 2048  ;;  %p2260_p11 = scmp.lt.s32.totalorder %s624_s28, %s624_s28 }
  0x6a   : > { %p2253_p8 = scmp.ne.s32.totalorder %s624_s28, %s2252_s26  ;;  %p2261_p12 = scmp.lt.s32.totalorder %s2252_s26, %s2252_s26 }
  0x6c   : > { %p2255_p9 = pnand %p2253_p8, %p2484_p7  ;;  %p2262_p2 = por %p2261_p12, %p2260_p11 }
  0x6e   : > { %p2256_p10 = pneg %p2255_p9 }
  0x70   : > { %p2263_p3 = pnand %p2262_p2, %p2256_p10 }
  0x72   : > { %2266 = shalt.err (!%p2263_p3)
}
  0x73   : > { %2088 = dma.hbm_to_vmem [thread:$0]  (!%p2468_p5), %s2770_s13, 2048, %s624_s28, [#allocation5], %s2319_s3, %s2319_s3, %s2320_s0  }
  0x74   : > { %s2321_s20 = smov [#allocation9]   ;;  %s2267_s6 = scalar_lea.hbm %s2778_s21, 2048 }
  0x75   : > { %s667_s22 = sshll.u32 %s2321_s20, 4  ;;  %p2268_p2 = scmp.ne.s32.totalorder %s2778_s21, %s2267_s6  ;;  %s668_s22 = int_to_ptr.vmem [resolvable:$true] %s667_s22 }
  0x76   : > { %p2274_p0 = scmp.lt.u32.totalorder %s2267_s6, %s2778_s21 }
  0x77   : > { %p2270_p3 = pnand %p2268_p2, %p2484_p7 }
  0x79   : > { %p2271_p13 = pneg %p2270_p3 }
  0x7b   : > { %p2276_p1 = pnand %p2274_p0, %p2271_p13 }
  0x7d   : > { %2279 = shalt.err (!%p2276_p1)
}
  0x7e   : > { %s2280_s28 = scalar_lea.vmem %s668_s22, 2048  ;;  %p2288_p9 = scmp.lt.s32.totalorder %s668_s22, %s668_s22 }
  0x7f   : > { %p2281_p4 = scmp.ne.s32.totalorder %s668_s22, %s2280_s28  ;;  %p2289_p10 = scmp.lt.s32.totalorder %s2280_s28, %s2280_s28 }
  0x81   : > { %p2283_p6 = pnand %p2281_p4, %p2484_p7  ;;  %p2290_p11 = por %p2289_p10, %p2288_p9 }
  0x83   : > { %p2284_p8 = pneg %p2283_p6 }
  0x85   : > { %p2291_p12 = pnand %p2290_p11, %p2284_p8 }
  0x87   : > { %2294 = shalt.err (!%p2291_p12)
}
  0x88   : > { %2094 = dma.hbm_to_vmem [thread:$0]  (!%p2468_p5), %s2778_s21, 2048, %s668_s22, [#allocation8], %s2319_s3, %s2319_s3, %s2320_s0  }
  0x89   : > { %p2803_p2 = scmp.ne.s32.totalorder %s2799_s24, 0 }
  0x8a   : > { %p2804_p7 = scmp.eq.s32.totalorder (!%p2803_p2), %s2451_s30, 0 }
  0x8b   : > { %693 = sbr.rel (%p2803_p2) target bundleno = 2588 (0xa1c), region = 112 }
  0x92   : > { %2300 = dma.done.wait (%p2804_p7), [#allocation3], 2048   ;;  %p2805_p3 = pmov %p2804_p7 }
  0x94   : > { %2302 = vsyncadd (%p2805_p3), [#allocation3], 4294965248  ;;  %p2806_p13 = pmov %p2805_p3 }
  0x95   : > { %p2807_p0 = pmov %p2805_p3 }
  0x96   : > { %2304 = dma.done.wait (%p2806_p13), [#allocation5], 4096  }
  0x97   : > { %2306 = vsyncadd (%p2807_p0), [#allocation5], 4294963200  ;;  %p2808_p1 = pmov %p2807_p0 }
  0x98   : > { %p2809_p5 = pmov %p2807_p0 }
  0x99   : > { %2308 = dma.done.wait (%p2808_p1), [#allocation8], 4096  }
  0x9a   : > { %2310 = vsyncadd (%p2809_p5), [#allocation8], 4294963200  ;;  %p771_p4 = scmp.lt.s32.totalorder %s2451_s30, 1  ;;  %s2810_s3 = sld [smem:[#allocation14_spill]]  ;;  %vm781_vm0 = vcmask 130048   ;;  %v2322_v5 = vmov 0.0|0.0  }
  0x9b   : > { %s2811_s23 = sld [smem:[#allocation15_spill]]  ;;  %1936 = vmatprep.subr.bf16.mxu0 %v2322_v5  ;;  %vm2323_vm1 = vmmov 0   ;;  %v2324_v7 = vmov 0.0   ;;  %1939 = vmatprep.subr.bf16.mxu1 %v2322_v5  ;;  %v905_v11 = vld [vmem:[#allocation2] sm:$0xff]  ;;  %v906_v12 = vld [vmem:[#allocation2 + $0x8] sm:$0xff]  ;;  %v907_v13 = vld [vmem:[#allocation2 + $0x10] sm:$0xff] }
  0x9c   : > { %s2823_s30 = smov (!%p771_p4, %s2451_s30), 1  ;;  %1758 = vmatprep.mubr.msk.f32.mxu0 %vm2323_vm1, %v2324_v7  ;;  %1793 = vmatprep.mubr.msk.f32.mxu1 %vm2323_vm1, %v2324_v7  ;;  %v1940_v14 = vpack.c.bf16 %v906_v12, %v905_v11  ;;  %v908_v15 = vld [vmem:[#allocation2 + $0x18] sm:$0xff]  ;;  %s2812_s5 = sld [smem:[#allocation16_spill]]  ;;  %v909_v27 = vld [vmem:[#allocation2 + $0x20] sm:$0xff]  ;;  %v910_v28 = vld [vmem:[#allocation2 + $0x28] sm:$0xff] }
  0x9d   : > { %s1640_s4 = sshll.u32 %s2823_s30, 3  ;;  %v1943_v16 = vpack.c.bf16 %v908_v15, %v907_v13  ;;  %v1946_v29 = vpack.c.bf16 %v910_v28, %v909_v27  ;;  %v911_v30 = vld [vmem:[#allocation2 + $0x30] sm:$0xff]  ;;  %v912_v31 = vld [vmem:[#allocation2 + $0x38] sm:$0xff]  ;;  %v913_v33 = vld [vmem:[#allocation2 + $0x40] sm:$0xff]  ;;  %s2813_s27 = sld [smem:[#allocation17_spill]] }
  0x9e   : > { %1941 = vmatpush3.bf16.msra.mxu1 %v1940_v14  ;;  %v1949_v32 = vpack.c.bf16 %v912_v31, %v911_v30  ;;  %v914_v34 = vld [vmem:[#allocation2 + $0x48] sm:$0xff]  ;;  %v915_v36 = vld [vmem:[#allocation2 + $0x50] sm:$0xff]  ;;  %v916_v37 = vld [vmem:[#allocation2 + $0x58] sm:$0xff]  ;;  %s2814_s2 = sld [smem:[#allocation18_spill]]  ;;  %s2815_s20 = sld [smem:[#allocation20_spill]] }
  0x9f   : > { %1942 = vmatprep.subr.bf16.mxu1 %v2322_v5  ;;  %v1952_v35 = vpack.c.bf16 %v914_v34, %v913_v33  ;;  %v1955_v38 = vpack.c.bf16 %v916_v37, %v915_v36  ;;  %v917_v39 = vld [vmem:[#allocation2 + $0x60] sm:$0xff]  ;;  %v918_v40 = vld [vmem:[#allocation2 + $0x68] sm:$0xff]  ;;  %v919_v42 = vld [vmem:[#allocation2 + $0x70] sm:$0xff]  ;;  %s2816_s6 = sld [smem:[#allocation21_spill]]  ;;  %s2817_s26 = sld [smem:[#allocation22_spill]] }
  0xa0   : > { %s774_s0 = scalar_lea.vmem %s2810_s3, %s1640_s4  ;;  %v1958_v41 = vpack.c.bf16 %v918_v40, %v917_v39  ;;  %v920_v43 = vld [vmem:[#allocation2 + $0x78] sm:$0xff]  ;;  %v1036_v59 = vld [vmem:[#allocation4] sm:$0xff]  ;;  %v1037_v60 = vld [vmem:[#allocation4 + $0x8] sm:$0xff]  ;;  %s2818_s19 = sld [smem:[#allocation23_spill]] }
  0xa1   : > { %v779_v0 = vld [vmem:[%s774_s0] sm:$0xff]  ;;  %v788_v4 = vld [vmem:[%s2811_s23 + $0x8] sm:$0xff]  ;;  %v1961_v44 = vpack.c.bf16 %v920_v43, %v919_v42  ;;  %v1038_v61 = vld [vmem:[#allocation4 + $0x10] sm:$0xff]  ;;  %v1964_v62 = vpack.c.bf16 %v1037_v60, %v1036_v59  ;;  %s2819_s3 = sld [smem:[#allocation24_spill]]  ;;  %s2820_s22 = sld [smem:[#allocation25_spill]] }
  0xa2   : > { %v780_v1 = vmul.f32 %v779_v0, %v779_v0  ;;  %v787_v3 = vld [vmem:[%s2811_s23] sm:$0xff]  ;;  %1944 = vmatpush3.bf16.msra.mxu1 %v1943_v16  ;;  %v1039_v63 = vld [vmem:[#allocation4 + $0x18] sm:$0xff]  ;;  %v1041_v15 = vld [vmem:[#allocation4 + $0x28] sm:$0xff] }
  0xa3   : > { %v1937_v6 = vpack.c.bf16 %v788_v4, %v787_v3  ;;  %1945 = vmatprep.subr.bf16.mxu1 %v2322_v5  ;;  %v1642_v17 = vld [vmem:[%s2812_s5] ss:$0 sm:$0xff]  ;;  %v1049_v27 = vld [vmem:[#allocation4 + $0x68] sm:$0xff]  ;;  %v1051_v30 = vld [vmem:[#allocation4 + $0x78] sm:$0xff] }
  0xa4   : > { %v782_v2 = vsel %vm781_vm0, %v780_v1, 0.0  ;;  %v1645_v54 = vld [vmem:[%s2813_s27] ss:$0 sm:$0xff] }
  0xa5   : > { %783 = vadd.xlane.f32.xlu0 %v782_v2  ;;  %1938 = vmatpush3.bf16.msra.mxu0 %v1937_v6  ;;  %v1646_v56 = vld [vmem:[%s2814_s2] ss:$0 sm:$0xff] }
  0xa6   : > { %1963 = vmatprep.subr.bf16.mxu0 %v2322_v5  ;;  %1947 = vmatpush3.bf16.msra.mxu1 %v1946_v29  ;;  %v1647_v1 = vld [vmem:[%s2815_s20] ss:$0 sm:$0xff]  ;;  %v1050_v29 = vld [vmem:[#allocation4 + $0x70] sm:$0xff] }
  0xa7   : > { %1948 = vmatprep.subr.bf16.mxu1 %v2322_v5  ;;  %v1040_v14 = vld [vmem:[#allocation4 + $0x20] sm:$0xff]  ;;  %v1985_v31 = vpack.c.bf16 %v1051_v30, %v1050_v29  ;;  %s778_s1 = scalar_lea.vmem %s2820_s22, %s1640_s4 }
  0xa8   : > { %v1970_v16 = vpack.c.bf16 %v1041_v15, %v1040_v14  ;;  %v1650_v43 = vld [vmem:[%s2765_s8] ss:$0 sm:$0xff]  ;;  %v1180_v15 = vld [vmem:[#allocation6 + $0x68] sm:$0xff] }
  0xa9   : > { %v1179_v14 = vld [vmem:[#allocation6 + $0x60] sm:$0xff] }
  0xaa   : > { %1950 = vmatpush3.bf16.msra.mxu1 %v1949_v32  ;;  %v1653_v29 = vld [vmem:[%s2768_s11] ss:$0 sm:$0xff] }
  0xab   : > { %1951 = vmatprep.subr.bf16.mxu1 %v2322_v5 }
  0xae   : > { %1953 = vmatpush3.bf16.msra.mxu1 %v1952_v35 }
  0xaf   : > { %1954 = vmatprep.subr.bf16.mxu1 %v2322_v5 }
  0xb2   : > { %1956 = vmatpush3.bf16.msra.mxu1 %v1955_v38 }
  0xb3   : > { %1957 = vmatprep.subr.bf16.mxu1 %v2322_v5 }
  0xb6   : > { %1959 = vmatpush3.bf16.msra.mxu1 %v1958_v41  ;;  %v1649_v41 = vld [vmem:[%s2816_s6] ss:$0 sm:$0xff] }
  0xb7   : > { %1960 = vmatprep.subr.bf16.mxu1 %v2322_v5 }
  0xba   : > { %1962 = vmatpush3.bf16.msra.mxu1 %v1961_v44 }
  0xbb   : > { %1987 = vmatprep.subr.bf16.mxu1 %v2322_v5 }
 0x132   : > { %v784_v8 = vpop.xlane.xlu0 %783 }
 0x133   : > { %2123 = vrsqrt.f32 %v784_v8 }
 0x13d   : > { %v2124_v9 = vpop.eup %2123 }
 0x13e   : > { %v786_v10 = vmul.f32 %v2124_v9, %v779_v0  ;;  %v1967_v0 = vpack.c.bf16 %v1039_v63, %v1038_v61 }
 0x140   : > { %1759 = vmatmul.mubr.msk.f32.vlgmr.msra.gmra.mrb[0].mxu0 %vm781_vm0, %v786_v10 }
 0x141   : > { %1828 = vmatprep.mubr.msk.f32.mxu0 %vm2323_vm1, %v2324_v7  ;;  %1965 = vmatpush3.bf16.msra.mxu0 %v1964_v62 }
 0x142   : > { %1966 = vmatprep.subr.bf16.mxu0 %v2322_v5 }
 0x145   : > { %1968 = vmatpush3.bf16.msra.mxu0 %v1967_v0 }
 0x146   : > { %1969 = vmatprep.subr.bf16.mxu0 %v2322_v5 }
 0x149   : > { %1971 = vmatpush3.bf16.msra.mxu0 %v1970_v16  ;;  %v2006_v16 = vpack.c.bf16 %v1180_v15, %v1179_v14 }
 0x14a   : > { %1972 = vmatprep.subr.bf16.mxu0 %v2322_v5 }
 0x213   : > { %v865_v18 = vpop.f32.mrb[0].mxu0 }
 0x214   : > { %v866_v19 = vadd.f32 %v1642_v17, %v865_v18  ;;  %v1760_v20 = vpop.f32.mrb[1].mxu0  ;;  %v1042_v17 = vld [vmem:[#allocation4 + $0x30] sm:$0xff]  ;;  %v1043_v18 = vld [vmem:[#allocation4 + $0x38] sm:$0xff] }
 0x215   : > { %v1044_v20 = vld [vmem:[#allocation4 + $0x40] sm:$0xff] }
 0x216   : > { %v1644_v21 = vmul.f32 -1.442695, %v866_v19 }
 0x218   : > { %2125 = vpow2.f32 %v1644_v21  ;;  %v1045_v21 = vld [vmem:[#allocation4 + $0x48] sm:$0xff] }
 0x222   : > { %v2126_v22 = vpop.eup %2125 }
 0x223   : > { %v872_v23 = vadd.f32 1.0, %v2126_v22  ;;  %v1976_v22 = vpack.c.bf16 %v1045_v21, %v1044_v20 }
 0x225   : > { %2127 = vrcp.f32 %v872_v23  ;;  %v1046_v23 = vld [vmem:[#allocation4 + $0x50] sm:$0xff] }
 0x22f   : > { %v2128_v24 = vpop.eup %2127 }
 0x230   : > { %v875_v25 = vmul.f32 %v2128_v24, %v866_v19  ;;  %v1973_v19 = vpack.c.bf16 %v1043_v18, %v1042_v17  ;;  %v1047_v24 = vld [vmem:[#allocation4 + $0x58] sm:$0xff]  ;;  %v1181_v17 = vld [vmem:[#allocation6 + $0x70] sm:$0xff] }
 0x231   : > { %v1182_v18 = vld [vmem:[#allocation6 + $0x78] sm:$0xff] }
 0x232   : > { %876 = vadd.xlane.f32.xlu0 %v875_v25  ;;  %v878_v26 = vmul.f32 %v875_v25, %v875_v25  ;;  %1974 = vmatpush3.bf16.msra.mxu0 %v1973_v19  ;;  %v2009_v19 = vpack.c.bf16 %v1182_v18, %v1181_v17  ;;  %v1658_v18 = vld [vmem:[%s2773_s16] ss:$0 sm:$0xff] }
 0x233   : > { %1975 = vmatprep.subr.bf16.mxu0 %v2322_v5 }
 0x234   : > { %879 = vadd.xlane.f32.xlu1 %v878_v26  ;;  %v1048_v26 = vld [vmem:[#allocation4 + $0x60] sm:$0xff] }
 0x235   : > { %v1982_v28 = vpack.c.bf16 %v1049_v27, %v1048_v26 }
 0x236   : > { %1977 = vmatpush3.bf16.msra.mxu0 %v1976_v22 }
 0x237   : > { %1978 = vmatprep.subr.bf16.mxu0 %v2322_v5 }
 0x2bf   : > { %v877_v45 = vpop.xlane.xlu0 %876 }
 0x2c0   : > { %v881_v46 = vmul.f32 0.03125, %v877_v45 }
 0x2c1   : > { %v880_v47 = vpop.xlane.xlu1 %879 }
 0x2c2   : > { %v883_v48 = vmul.f32 %v881_v46, %v881_v46  ;;  %v882_v49 = vmul.f32 0.03125, %v880_v47  ;;  %v885_v52 = vsub.f32 %v875_v25, %v881_v46  ;;  %v1979_v25 = vpack.c.bf16 %v1047_v24, %v1046_v23  ;;  %v1167_v46 = vld [vmem:[#allocation6] sm:$0xff]  ;;  %v1168_v47 = vld [vmem:[#allocation6 + $0x8] sm:$0xff] }
 0x2c4   : > { %v884_v50 = vsub.f32 %v882_v49, %v883_v48  ;;  %1980 = vmatpush3.bf16.msra.mxu0 %v1979_v25  ;;  %v1169_v48 = vld [vmem:[#allocation6 + $0x10] sm:$0xff]  ;;  %v1988_v49 = vpack.c.bf16 %v1168_v47, %v1167_v46 }
 0x2c5   : > { %1981 = vmatprep.subr.bf16.mxu0 %v2322_v5 }
 0x2c6   : > { %v886_v51 = vadd.f32 0.1, %v884_v50  ;;  %v1170_v50 = vld [vmem:[#allocation6 + $0x18] sm:$0xff] }
 0x2c8   : > { %2129 = vrsqrt.f32 %v886_v51  ;;  %1983 = vmatpush3.bf16.msra.mxu0 %v1982_v28  ;;  %v1991_v51 = vpack.c.bf16 %v1170_v50, %v1169_v48 }
 0x2c9   : > { %1984 = vmatprep.subr.bf16.mxu0 %v2322_v5 }
 0x2cc   : > { %1986 = vmatpush3.bf16.msra.mxu0 %v1985_v31  ;;  %v1654_v31 = vld [vmem:[%s2769_s12] ss:$0 sm:$0xff] }
 0x2cd   : > { %2011 = vmatprep.subr.bf16.mxu0 %v2322_v5 }
 0x2d2   : > { %v2130_v53 = vpop.eup %2129 }
 0x2d3   : > { %v888_v55 = vmul.f32 %v2130_v53, %v885_v52  ;;  %v1651_v52 = vld [vmem:[%s2767_s10] ss:$0 sm:$0xff] }
 0x2d5   : > { %v896_v57 = vmul.f32 %v1645_v54, %v888_v55 }
 0x2d7   : > { %v2661_v58 = vadd.f32 %v1646_v56, %v896_v57 }
 0x2d9   : > { %1794 = vmatmul.mubr.f32.vlgmr.msra.gmra.mrb[0].mxu1 %v2661_v58 }
 0x2da   : > { %1863 = vmatprep.mubr.msk.f32.mxu1 %vm2323_vm1, %v2324_v7  ;;  %1989 = vmatpush3.bf16.msra.mxu1 %v1988_v49 }
 0x2db   : > { %1990 = vmatprep.subr.bf16.mxu1 %v2322_v5 }
 0x2de   : > { %1992 = vmatpush3.bf16.msra.mxu1 %v1991_v51  ;;  %v1302_v51 = vld [vmem:[#allocation7 + $0x20] sm:$0xff] }
 0x2df   : > { %1993 = vmatprep.subr.bf16.mxu1 %v2322_v5 }
 0x3ac   : > { %v994_v2 = vpop.f32.mrb[0].mxu1 }
 0x3ad   : > { %v995_v3 = vadd.f32 %v1647_v1, %v994_v2  ;;  %v1795_v4 = vpop.f32.mrb[1].mxu1  ;;  %v1171_v1 = vld [vmem:[#allocation6 + $0x20] sm:$0xff]  ;;  %v1172_v2 = vld [vmem:[#allocation6 + $0x28] sm:$0xff] }
 0x3ae   : > { %v1174_v4 = vld [vmem:[#allocation6 + $0x38] sm:$0xff] }
 0x3af   : > { %v998_v6 = vadd.f32 %v995_v3, %v2661_v58  ;;  %v1994_v3 = vpack.c.bf16 %v1172_v2, %v1171_v1  ;;  %v1311_v1 = vld [vmem:[#allocation7 + $0x68] sm:$0xff] }
 0x3b1   : > { %v1648_v8 = vmul.f32 -1.442695, %v998_v6  ;;  %1995 = vmatpush3.bf16.msra.mxu1 %v1994_v3  ;;  %v1312_v3 = vld [vmem:[#allocation7 + $0x70] sm:$0xff] }
 0x3b2   : > { %1996 = vmatprep.subr.bf16.mxu1 %v2322_v5 }
 0x3b3   : > { %2131 = vpow2.f32 %v1648_v8  ;;  %v1175_v8 = vld [vmem:[#allocation6 + $0x40] sm:$0xff] }
 0x3bd   : > { %v2132_v9 = vpop.eup %2131 }
 0x3be   : > { %v1002_v10 = vadd.f32 1.0, %v2132_v9  ;;  %v1176_v9 = vld [vmem:[#allocation6 + $0x48] sm:$0xff] }
 0x3c0   : > { %2133 = vrcp.f32 %v1002_v10  ;;  %v2000_v10 = vpack.c.bf16 %v1176_v9, %v1175_v8 }
 0x3ca   : > { %v2134_v11 = vpop.eup %2133 }
 0x3cb   : > { %v1005_v12 = vmul.f32 %v2134_v11, %v998_v6  ;;  %v1177_v11 = vld [vmem:[#allocation6 + $0x50] sm:$0xff] }
 0x3cd   : > { %1006 = vadd.xlane.f32.xlu1 %v1005_v12  ;;  %v1008_v13 = vmul.f32 %v1005_v12, %v1005_v12 }
 0x3cf   : > { %1009 = vadd.xlane.f32.xlu0 %v1008_v13 }
 0x45a   : > { %v1007_v32 = vpop.xlane.xlu1 %1006 }
 0x45b   : > { %v1011_v33 = vmul.f32 0.03125, %v1007_v32 }
 0x45c   : > { %v1010_v34 = vpop.xlane.xlu0 %1009 }
 0x45d   : > { %v1013_v35 = vmul.f32 %v1011_v33, %v1011_v33  ;;  %v1012_v36 = vmul.f32 0.03125, %v1010_v34  ;;  %v1015_v39 = vsub.f32 %v1005_v12, %v1011_v33  ;;  %v1178_v12 = vld [vmem:[#allocation6 + $0x58] sm:$0xff]  ;;  %v1298_v34 = vld [vmem:[#allocation7] sm:$0xff] }
 0x45e   : > { %v2003_v13 = vpack.c.bf16 %v1178_v12, %v1177_v11 }
 0x45f   : > { %v1014_v37 = vsub.f32 %v1012_v36, %v1013_v35  ;;  %v1299_v35 = vld [vmem:[#allocation7 + $0x8] sm:$0xff]  ;;  %v1300_v36 = vld [vmem:[#allocation7 + $0x10] sm:$0xff] }
 0x461   : > { %v1016_v38 = vadd.f32 0.1, %v1014_v37  ;;  %v2012_v37 = vpack.c.bf16 %v1299_v35, %v1298_v34 }
 0x463   : > { %2135 = vrsqrt.f32 %v1016_v38  ;;  %v1301_v38 = vld [vmem:[#allocation7 + $0x18] sm:$0xff] }
 0x46d   : > { %v2136_v40 = vpop.eup %2135 }
 0x46e   : > { %v1018_v42 = vmul.f32 %v2136_v40, %v1015_v39  ;;  %v2015_v39 = vpack.c.bf16 %v1301_v38, %v1300_v36  ;;  %v1655_v40 = vld [vmem:[%s2771_s14] ss:$0 sm:$0xff] }
 0x470   : > { %v1026_v44 = vmul.f32 %v1649_v41, %v1018_v42 }
 0x472   : > { %v1034_v45 = vadd.f32 %v1650_v43, %v1026_v44 }
 0x474   : > { %1829 = vmatmul.mubr.f32.vlgmr.msra.gmra.mrb[2].mxu0 %v1034_v45  ;;  %v2692_v54 = vadd.f32 %v1034_v45, %v2661_v58  ;;  %v1173_v58 = vld [vmem:[#allocation6 + $0x30] sm:$0xff] }
 0x475   : > { %1898 = vmatprep.mubr.msk.f32.mxu0 %vm2323_vm1, %v2324_v7  ;;  %v1997_v6 = vpack.c.bf16 %v1174_v4, %v1173_v58  ;;  %2013 = vmatpush3.bf16.msra.mxu0 %v2012_v37  ;;  %v1313_v58 = vld [vmem:[#allocation7 + $0x78] sm:$0xff] }
 0x476   : > { %2014 = vmatprep.subr.bf16.mxu0 %v2322_v5  ;;  %v2033_v4 = vpack.c.bf16 %v1313_v58, %v1312_v3 }
 0x477   : > { %1998 = vmatpush3.bf16.msra.mxu1 %v1997_v6 }
 0x478   : > { %1999 = vmatprep.subr.bf16.mxu1 %v2322_v5 }
 0x479   : > { %2016 = vmatpush3.bf16.msra.mxu0 %v2015_v39  ;;  %v1432_v39 = vld [vmem:[#allocation9 + $0x20] sm:$0xff] }
 0x47a   : > { %2017 = vmatprep.subr.bf16.mxu0 %v2322_v5 }
 0x47b   : > { %2001 = vmatpush3.bf16.msra.mxu1 %v2000_v10 }
 0x47c   : > { %2002 = vmatprep.subr.bf16.mxu1 %v2322_v5 }
 0x47f   : > { %2004 = vmatpush3.bf16.msra.mxu1 %v2003_v13 }
 0x480   : > { %2005 = vmatprep.subr.bf16.mxu1 %v2322_v5 }
 0x483   : > { %2007 = vmatpush3.bf16.msra.mxu1 %v2006_v16  ;;  %v1657_v16 = vld [vmem:[%s2772_s15] ss:$0 sm:$0xff] }
 0x484   : > { %2008 = vmatprep.subr.bf16.mxu1 %v2322_v5 }
 0x487   : > { %2010 = vmatpush3.bf16.msra.mxu1 %v2009_v19 }
 0x488   : > { %2035 = vmatprep.subr.bf16.mxu1 %v2322_v5 }
 0x547   : > { %v1125_v53 = vpop.f32.mrb[2].mxu0 }
 0x548   : > { %v1126_v55 = vadd.f32 %v1651_v52, %v1125_v53  ;;  %v1830_v56 = vpop.f32.mrb[3].mxu0  ;;  %v1303_v52 = vld [vmem:[#allocation7 + $0x28] sm:$0xff] }
 0x549   : > { %v2018_v53 = vpack.c.bf16 %v1303_v52, %v1302_v51  ;;  %v1441_v51 = vld [vmem:[#allocation9 + $0x68] sm:$0xff] }
 0x54a   : > { %v1129_v57 = vadd.f32 %v1126_v55, %v2692_v54  ;;  %v1305_v55 = vld [vmem:[#allocation7 + $0x38] sm:$0xff] }
 0x54b   : > { %2019 = vmatpush3.bf16.msra.mxu0 %v2018_v53  ;;  %v1442_v53 = vld [vmem:[#allocation9 + $0x70] sm:$0xff] }
 0x54c   : > { %v1652_v59 = vmul.f32 -1.442695, %v1129_v57  ;;  %2020 = vmatprep.subr.bf16.mxu0 %v2322_v5 }
 0x54e   : > { %2137 = vpow2.f32 %v1652_v59  ;;  %v1307_v59 = vld [vmem:[#allocation7 + $0x48] sm:$0xff] }
 0x558   : > { %v2138_v60 = vpop.eup %2137 }
 0x559   : > { %v1133_v61 = vadd.f32 1.0, %v2138_v60 }
 0x55b   : > { %2139 = vrcp.f32 %v1133_v61  ;;  %v1308_v61 = vld [vmem:[#allocation7 + $0x50] sm:$0xff] }
 0x565   : > { %v2140_v62 = vpop.eup %2139 }
 0x566   : > { %v1136_v63 = vmul.f32 %v2140_v62, %v1129_v57  ;;  %v1306_v57 = vld [vmem:[#allocation7 + $0x40] sm:$0xff]  ;;  %v1309_v62 = vld [vmem:[#allocation7 + $0x58] sm:$0xff] }
 0x567   : > { %v2024_v60 = vpack.c.bf16 %v1307_v59, %v1306_v57 }
 0x568   : > { %1137 = vadd.xlane.f32.xlu1 %v1136_v63  ;;  %v1139_v0 = vmul.f32 %v1136_v63, %v1136_v63 }
 0x56a   : > { %1140 = vadd.xlane.f32.xlu0 %v1139_v0  ;;  %v1310_v0 = vld [vmem:[#allocation7 + $0x60] sm:$0xff] }
 0x56b   : > { %v2030_v2 = vpack.c.bf16 %v1311_v1, %v1310_v0 }
 0x5f5   : > { %v1138_v20 = vpop.xlane.xlu1 %1137 }
 0x5f6   : > { %v1142_v21 = vmul.f32 0.03125, %v1138_v20 }
 0x5f7   : > { %v1141_v22 = vpop.xlane.xlu0 %1140 }
 0x5f8   : > { %v1144_v23 = vmul.f32 %v1142_v21, %v1142_v21  ;;  %v1143_v24 = vmul.f32 0.03125, %v1141_v22  ;;  %v1146_v27 = vsub.f32 %v1136_v63, %v1142_v21  ;;  %v2027_v63 = vpack.c.bf16 %v1309_v62, %v1308_v61  ;;  %v1428_v21 = vld [vmem:[#allocation9] sm:$0xff]  ;;  %v1429_v22 = vld [vmem:[#allocation9 + $0x8] sm:$0xff] }
 0x5fa   : > { %v1145_v25 = vsub.f32 %v1143_v24, %v1144_v23  ;;  %v1430_v23 = vld [vmem:[#allocation9 + $0x10] sm:$0xff]  ;;  %v2036_v24 = vpack.c.bf16 %v1429_v22, %v1428_v21 }
 0x5fc   : > { %v1147_v26 = vadd.f32 0.1, %v1145_v25  ;;  %v1431_v25 = vld [vmem:[#allocation9 + $0x18] sm:$0xff] }
 0x5fe   : > { %2141 = vrsqrt.f32 %v1147_v26  ;;  %v2039_v26 = vpack.c.bf16 %v1431_v25, %v1430_v23 }
 0x608   : > { %v2142_v28 = vpop.eup %2141 }
 0x609   : > { %v1149_v30 = vmul.f32 %v2142_v28, %v1146_v27  ;;  %v1659_v27 = vld [vmem:[%s2775_s18] ss:$0 sm:$0xff] }
 0x60b   : > { %v1157_v32 = vmul.f32 %v1653_v29, %v1149_v30 }
 0x60d   : > { %v1165_v33 = vadd.f32 %v1654_v31, %v1157_v32 }
 0x60f   : > { %1864 = vmatmul.mubr.f32.vlgmr.msra.gmra.mrb[2].mxu1 %v1165_v33  ;;  %v2715_v42 = vadd.f32 %v1165_v33, %v2692_v54  ;;  %v1304_v54 = vld [vmem:[#allocation7 + $0x30] sm:$0xff] }
 0x610   : > { %1933 = vmatprep.mubr.msk.f32.mxu1 %vm2323_vm1, %v2324_v7  ;;  %v2021_v56 = vpack.c.bf16 %v1305_v55, %v1304_v54  ;;  %2037 = vmatpush3.bf16.msra.mxu1 %v2036_v24  ;;  %v1443_v54 = vld [vmem:[#allocation9 + $0x78] sm:$0xff] }
 0x611   : > { %2038 = vmatprep.subr.bf16.mxu1 %v2322_v5  ;;  %v2057_v55 = vpack.c.bf16 %v1443_v54, %v1442_v53 }
 0x612   : > { %2022 = vmatpush3.bf16.msra.mxu0 %v2021_v56 }
 0x613   : > { %2023 = vmatprep.subr.bf16.mxu0 %v2322_v5 }
 0x614   : > { %2040 = vmatpush3.bf16.msra.mxu1 %v2039_v26 }
 0x615   : > { %2041 = vmatprep.subr.bf16.mxu1 %v2322_v5 }
 0x616   : > { %2025 = vmatpush3.bf16.msra.mxu0 %v2024_v60 }
 0x617   : > { %2026 = vmatprep.subr.bf16.mxu0 %v2322_v5 }
 0x61a   : > { %2028 = vmatpush3.bf16.msra.mxu0 %v2027_v63 }
 0x61b   : > { %2029 = vmatprep.subr.bf16.mxu0 %v2322_v5 }
 0x61e   : > { %2031 = vmatpush3.bf16.msra.mxu0 %v2030_v2  ;;  %v1661_v2 = vld [vmem:[%s2817_s26] ss:$0 sm:$0xff] }
 0x61f   : > { %2032 = vmatprep.subr.bf16.mxu0 %v2322_v5 }
 0x622   : > { %2034 = vmatpush3.bf16.msra.mxu0 %v2033_v4 }
 0x6e2   : > { %v1256_v41 = vpop.f32.mrb[2].mxu1 }
 0x6e3   : > { %v1257_v7 = vadd.f32 %v1655_v40, %v1256_v41  ;;  %v1865_v43 = vpop.f32.mrb[3].mxu1  ;;  %v1433_v40 = vld [vmem:[#allocation9 + $0x28] sm:$0xff] }
 0x6e4   : > { %v2042_v41 = vpack.c.bf16 %v1433_v40, %v1432_v39 }
 0x6e5   : > { %v1260_v44 = vadd.f32 %v1257_v7, %v2715_v42  ;;  %v1435_v7 = vld [vmem:[#allocation9 + $0x38] sm:$0xff] }
 0x6e6   : > { %2043 = vmatpush3.bf16.msra.mxu1 %v2042_v41 }
 0x6e7   : > { %v1656_v45 = vmul.f32 -1.442695, %v1260_v44  ;;  %2044 = vmatprep.subr.bf16.mxu1 %v2322_v5 }
 0x6e9   : > { %2143 = vpow2.f32 %v1656_v45  ;;  %v1437_v45 = vld [vmem:[#allocation9 + $0x48] sm:$0xff] }
 0x6f3   : > { %v2144_v46 = vpop.eup %2143 }
 0x6f4   : > { %v1264_v47 = vadd.f32 1.0, %v2144_v46 }
 0x6f6   : > { %2145 = vrcp.f32 %v1264_v47  ;;  %v1438_v47 = vld [vmem:[#allocation9 + $0x50] sm:$0xff] }
 0x700   : > { %v2146_v48 = vpop.eup %2145 }
 0x701   : > { %v1267_v49 = vmul.f32 %v2146_v48, %v1260_v44  ;;  %v1436_v44 = vld [vmem:[#allocation9 + $0x40] sm:$0xff]  ;;  %v1439_v48 = vld [vmem:[#allocation9 + $0x58] sm:$0xff] }
 0x702   : > { %v2048_v46 = vpack.c.bf16 %v1437_v45, %v1436_v44 }
 0x703   : > { %1268 = vadd.xlane.f32.xlu1 %v1267_v49  ;;  %v1270_v50 = vmul.f32 %v1267_v49, %v1267_v49 }
 0x705   : > { %1271 = vadd.xlane.f32.xlu0 %v1270_v50  ;;  %v1440_v50 = vld [vmem:[#allocation9 + $0x60] sm:$0xff] }
 0x706   : > { %v2054_v52 = vpack.c.bf16 %v1441_v51, %v1440_v50 }
 0x790   : > { %v1269_v6 = vpop.xlane.xlu1 %1268 }
 0x791   : > { %v1273_v8 = vmul.f32 0.03125, %v1269_v6  ;;  %v1663_v6 = vld [vmem:[%s2819_s3] ss:$0 sm:$0xff] }
 0x792   : > { %v1272_v9 = vpop.xlane.xlu0 %1271 }
 0x793   : > { %v1275_v10 = vmul.f32 %v1273_v8, %v1273_v8  ;;  %v1274_v11 = vmul.f32 0.03125, %v1272_v9  ;;  %v1277_v14 = vsub.f32 %v1267_v49, %v1273_v8  ;;  %v2051_v49 = vpack.c.bf16 %v1439_v48, %v1438_v47 }
 0x795   : > { %v1276_v12 = vsub.f32 %v1274_v11, %v1275_v10 }
 0x797   : > { %v1278_v13 = vadd.f32 0.1, %v1276_v12 }
 0x799   : > { %2147 = vrsqrt.f32 %v1278_v13 }
 0x7a3   : > { %v2148_v15 = vpop.eup %2147 }
 0x7a4   : > { %v1280_v17 = vmul.f32 %v2148_v15, %v1277_v14 }
 0x7a6   : > { %v1288_v19 = vmul.f32 %v1657_v16, %v1280_v17 }
 0x7a8   : > { %v1296_v20 = vadd.f32 %v1658_v18, %v1288_v19 }
 0x7aa   : > { %1899 = vmatmul.mubr.f32.vlgmr.msra.gmra.mrb[4].mxu0 %v1296_v20  ;;  %v1297_v29 = vadd.f32 %v1296_v20, %v2715_v42  ;;  %v1434_v42 = vld [vmem:[#allocation9 + $0x30] sm:$0xff] }
 0x7ab   : > { %v2045_v43 = vpack.c.bf16 %v1435_v7, %v1434_v42 }
 0x7ad   : > { %2046 = vmatpush3.bf16.msra.mxu1 %v2045_v43 }
 0x7ae   : > { %2047 = vmatprep.subr.bf16.mxu1 %v2322_v5 }
 0x7b1   : > { %2049 = vmatpush3.bf16.msra.mxu1 %v2048_v46 }
 0x7b2   : > { %2050 = vmatprep.subr.bf16.mxu1 %v2322_v5 }
 0x7b5   : > { %2052 = vmatpush3.bf16.msra.mxu1 %v2051_v49 }
 0x7b6   : > { %2053 = vmatprep.subr.bf16.mxu1 %v2322_v5 }
 0x7b9   : > { %2055 = vmatpush3.bf16.msra.mxu1 %v2054_v52 }
 0x7ba   : > { %2056 = vmatprep.subr.bf16.mxu1 %v2322_v5  ;;  %v1662_v5 = vld [vmem:[%s2818_s19] ss:$0 sm:$0xff] }
 0x7bd   : > { %2058 = vmatpush3.bf16.msra.mxu1 %v2057_v55 }
 0x87d   : > { %v1387_v28 = vpop.f32.mrb[4].mxu0 }
 0x87e   : > { %v1388_v30 = vadd.f32 %v1659_v27, %v1387_v28  ;;  %v1900_v31 = vpop.f32.mrb[5].mxu0 }
 0x880   : > { %v1391_v32 = vadd.f32 %v1388_v30, %v1297_v29 }
 0x882   : > { %v1660_v33 = vmul.f32 -1.442695, %v1391_v32 }
 0x884   : > { %2149 = vpow2.f32 %v1660_v33 }
 0x88e   : > { %v2150_v34 = vpop.eup %2149 }
 0x88f   : > { %v1395_v35 = vadd.f32 1.0, %v2150_v34 }
 0x891   : > { %2151 = vrcp.f32 %v1395_v35 }
 0x89b   : > { %v2152_v36 = vpop.eup %2151 }
 0x89c   : > { %v1398_v37 = vmul.f32 %v2152_v36, %v1391_v32 }
 0x89e   : > { %1399 = vadd.xlane.f32.xlu1 %v1398_v37  ;;  %v1401_v38 = vmul.f32 %v1398_v37, %v1398_v37 }
 0x8a0   : > { %1402 = vadd.xlane.f32.xlu0 %v1401_v38 }
 0x92b   : > { %v1400_v56 = vpop.xlane.xlu1 %1399 }
 0x92c   : > { %v1404_v57 = vmul.f32 0.03125, %v1400_v56 }
 0x92d   : > { %v1403_v59 = vpop.xlane.xlu0 %1402 }
 0x92e   : > { %v1406_v60 = vmul.f32 %v1404_v57, %v1404_v57  ;;  %v1405_v61 = vmul.f32 0.03125, %v1403_v59  ;;  %v1408_v0 = vsub.f32 %v1398_v37, %v1404_v57 }
 0x930   : > { %v1407_v62 = vsub.f32 %v1405_v61, %v1406_v60 }
 0x932   : > { %v1409_v63 = vadd.f32 0.1, %v1407_v62 }
 0x934   : > { %2153 = vrsqrt.f32 %v1409_v63 }
 0x93e   : > { %v2154_v1 = vpop.eup %2153 }
 0x93f   : > { %v1411_v3 = vmul.f32 %v2154_v1, %v1408_v0 }
 0x941   : > { %v1419_v58 = vmul.f32 %v1661_v2, %v1411_v3 }
 0x943   : > { %v1427_v4 = vadd.f32 %v1662_v5, %v1419_v58 }
 0x945   : > { %1934 = vmatmul.mubr.f32.vlgmr.msra.gmra.mrb[4].mxu1 %v1427_v4 }
 0xa18   : > { %v1517_v8 = vpop.f32.mrb[4].mxu1 }
 0xa19   : > { %v1518_v9 = vadd.f32 %v1663_v6, %v1517_v8  ;;  %v1935_v10 = vpop.f32.mrb[5].mxu1 }
 0xa1b   : > { %1521 = vst [vmem:[%s778_s1] sm:$0xff] %v1518_v9 }
 0xa1c PF: > { %s2821_s6 = sld [smem:[#allocation13_spill]] }
 0xa22   : > { %s36_s4 = sadd.s32 1, %s2821_s6  }
 0xa23   : > { %p33_p6 = scmp.ge.s32.totalorder %s36_s4, 4  }
 0xa25   :  { %35 = sbr.rel (!%p33_p6) target bundleno = 16 (0x10), region = 163 }
 0xa2c   :  { %1541 = vsyncpa [#allocation3], 1 }
 0xa2d   :  { %1543 = vsyncpa [#allocation3 + $0x1], 1 }
 0xa2e   :  { %1544 = vsyncpa [#allocation5], 1 }
 0xa2f   :  { %1545 = vsyncpa [#allocation8], 1 }

</bundles_post_ra>
